<compile_context>
chip_gen: v7x
topology: tpu7x:2x2x1
jax: 0.10.0
libtpu: 0.0.40
codegen_flags: <defaults>
</compile_context>

<pallas_src>
import math

import jax
import jax.numpy as jnp
from jax.experimental import pallas as pl
from jax.experimental.pallas import tpu as pltpu


def _round_up(x, m):
    return ((x + m - 1) // m) * m


def _discriminator_kernel(xT_ref, w01t_ref, b01_ref, w23_ref, b23_ref, o_ref):
    n_in = xT_ref.shape[0]

    # ---- folded fc0+fc1: hT[j, b] = b01[j] + sum_k W01[k, j] * x[b, k] ----
    # K = n_in = 2 -> broadcasted VPU FMAs; keep this tiny-K contraction off the MXU.
    hT = b01_ref[...] + w01t_ref[:, 0:1] * xT_ref[0:1, :]            # (H, tb)
    for k in range(1, n_in):                                          # static, tiny
        hT = hT + w01t_ref[:, k:k + 1] * xT_ref[k:k + 1, :]

    # ---- folded fc2+fc3: VPU multiply + cross-sublane (XLU) reduce, N = 1 ----
    logits = jnp.sum(hT * w23_ref[...], axis=0, keepdims=True) + b23_ref[...]  # (1, tb)

    # ---- numerically stable sigmoid: one exp, overflow-free on both branches ----
    z = jnp.exp(-jnp.abs(logits))            # z in (0, 1]
    r = 1.0 / (1.0 + z)
    o_ref[...] = jnp.where(logits >= 0.0, r, z * r)


def _fold_params(params):
    """Fold the four activation-free Linear layers into two affine stages."""
    hp = dict(precision="highest")  # keep the fold in full f32 on the MXU
    w01 = jnp.dot(params["w0"], params["w1"], **hp)                    # (n_in, 512)
    b01 = jnp.dot(params["b0"], params["w1"], **hp) + params["b1"]     # (1, 512)
    w23 = jnp.dot(params["w2"], params["w3"], **hp)                    # (512, 1)
    b23 = jnp.dot(params["b2"], params["w3"], **hp) + params["b3"]     # (1, 1)
    # w01T as (512, n_in) columns, b01 as a (512, 1) column for the transposed kernel.
    return w01.T, b01.T, w23, b23


def discriminator_forward(x, params, *, tile_b=1024):
    """x: (B, n_in) float32. params: dict with w0..w3 stored (in, out), b0..b3 (1, out)."""
    B, n_in = x.shape

    w01t, b01, w23, b23 = _fold_params(params)
    hidden = w01t.shape[0]

    # Batch lives on the LANE axis inside the kernel -> tile must be a multiple
    # of 128 (lane-dense blocks), or the whole (padded) batch.
    tb_full = _round_up(B, 128)
    tb = min(_round_up(tile_b, 128), tb_full)
    # v7x has two TensorCores: keep >= 2 grid steps when the batch is large
    # enough to split so the "parallel" axis can actually be sharded.
    if tb == tb_full and tb_full >= 256:
        tb = _round_up(tb_full // 2, 128)
    Bp = _round_up(B, tb)

    # Features-major, lane-dense input slab (n_in, Bp); zero-padded rows are
    # computed but sliced away afterwards.
    xT = jnp.pad(x.T, ((0, 0), (0, Bp - B)))

    def resident(arr):
        # Full-array block with a constant index map: stays VMEM-resident
        # across the whole batch grid.  Post-fold the weights are ~5 KB total,
        # so double-buffering them is irrelevant (no pipeline_mode override).
        return pl.BlockSpec(arr.shape, lambda i: (0, 0))

    flops = Bp * (2 * n_in * hidden + 2 * hidden + 2)
    weight_bytes = sum(int(a.size) * a.dtype.itemsize for a in (w01t, b01, w23, b23))
    cost = pl.CostEstimate(
        flops=flops,
        transcendentals=Bp,  # one exp per row
        bytes_accessed=weight_bytes + (n_in + 1) * Bp * 4,
    )

    out = pl.pallas_call(
        _discriminator_kernel,
        out_shape=jax.ShapeDtypeStruct((1, Bp), jnp.float32),
        grid=(Bp // tb,),
        in_specs=[
            pl.BlockSpec((n_in, tb), lambda i: (0, i)),   # xT: tiled over batch lanes
            resident(w01t),
            resident(b01),
            resident(w23),
            resident(b23),
        ],
        out_specs=pl.BlockSpec((1, tb), lambda i: (0, i)),  # lane-dense output row
        compiler_params=pltpu.CompilerParams(
            dimension_semantics=("parallel",)),
        cost_estimate=cost,
    )(xT, w01t, b01, w23, b23)

    return out[0, :B][:, None]  # back to (B, 1)


def init_discriminator_params(key, gaussian_dimension=2):
    """PyTorch nn.Linear-style uniform(-1/sqrt(fan_in), 1/sqrt(fan_in)) init.
    Weights stored as (in, out); biases as (1, out)."""
    dims = [gaussian_dimension, 1024, 512, 256, 1]
    params = {}
    keys = jax.random.split(key, 2 * (len(dims) - 1))
    for i in range(len(dims) - 1):
        fan_in, fan_out = dims[i], dims[i + 1]
        bound = 1.0 / math.sqrt(fan_in)
        wk, bk = keys[2 * i], keys[2 * i + 1]
        params[f"w{i}"] = jax.random.uniform(wk, (fan_in, fan_out), jnp.float32, -bound, bound)
        params[f"b{i}"] = jax.random.uniform(bk, (1, fan_out), jnp.float32, -bound, bound)
    return params


def discriminator_reference(x, params):
    """Pure-JAX layered reference matching the PyTorch forward (no hidden activations)."""
    hp = dict(precision="highest")
    h = jnp.dot(x, params["w0"], **hp) + params["b0"]
    h = jnp.dot(h, params["w1"], **hp) + params["b1"]
    h = jnp.dot(h, params["w2"], **hp) + params["b2"]
    h = jnp.dot(h, params["w3"], **hp) + params["b3"]
    return jax.nn.sigmoid(h)


if __name__ == "__main__":
    key = jax.random.PRNGKey(0)
    pkey, xkey = jax.random.split(key)

    gaussian_dimension = 2
    params = init_discriminator_params(pkey, gaussian_dimension)

    # Small batch (40) -> single 128-lane tile, exercises lane padding.
    x = jax.random.normal(xkey, (40, gaussian_dimension), jnp.float32)
    ref = discriminator_reference(x, params)
    out = jax.block_until_ready(discriminator_forward(x, params))
    assert out.shape == (40, 1), out.shape
    assert jnp.allclose(out, ref, atol=1e-5, rtol=1e-5), float(jnp.max(jnp.abs(out - ref)))

    # Multi-tile grid path (tile_b=128 -> 3 grid steps, last one padded).
    x2 = jax.random.normal(jax.random.PRNGKey(1), (300, gaussian_dimension), jnp.float32)
    ref2 = discriminator_reference(x2, params)
    out2 = jax.block_until_ready(discriminator_forward(x2, params, tile_b=128))
    assert out2.shape == (300, 1), out2.shape
    assert jnp.allclose(out2, ref2, atol=1e-5, rtol=1e-5), float(jnp.max(jnp.abs(out2 - ref2)))

    # Large-tile request auto-splits into 2 grid steps (v7x megacore path).
    x3 = jax.random.normal(jax.random.PRNGKey(2), (512, gaussian_dimension), jnp.float32)
    ref3 = discriminator_reference(x3, params)
    out3 = jax.block_until_ready(discriminator_forward(x3, params))
    assert out3.shape == (512, 1), out3.shape
    assert jnp.allclose(out3, ref3, atol=1e-5, rtol=1e-5), float(jnp.max(jnp.abs(out3 - ref3)))

    print("KERNEL_OK")
</pallas_src>

<mosaic_0001>
module attributes {stable_mosaic.version = 11 : i64} {
  func.func @_discriminator_kernel(%arg0: i32, %arg1: memref<2x128xf32, #tpu.memory_space<vmem>>, %arg2: memref<512x2xf32, #tpu.memory_space<vmem>>, %arg3: memref<512x1xf32, #tpu.memory_space<vmem>>, %arg4: memref<512x1xf32, #tpu.memory_space<vmem>>, %arg5: memref<1x1xf32, #tpu.memory_space<vmem>>, %arg6: memref<1x128xf32, #tpu.memory_space<vmem>>) attributes {dimension_semantics = [#tpu.dimension_semantics<parallel>], iteration_bounds = array<i64: 1>, scalar_prefetch = 0 : i64, scratch_operands = 0 : i64, tpu.core_type = #tpu.core_type<tc>, window_params = [{transform_indices = @transform_0, window_bounds = array<i64: 2, 128>}, {pipeline_mode = #tpu.pipeline_mode<synchronous>, transform_indices = @transform_1, window_bounds = array<i64: 512, 2>}, {pipeline_mode = #tpu.pipeline_mode<synchronous>, transform_indices = @transform_2, window_bounds = array<i64: 512, 1>}, {pipeline_mode = #tpu.pipeline_mode<synchronous>, transform_indices = @transform_3, window_bounds = array<i64: 512, 1>}, {pipeline_mode = #tpu.pipeline_mode<synchronous>, transform_indices = @transform_4, window_bounds = array<i64: 1, 1>}, {transform_indices = @transform_5, window_bounds = array<i64: 1, 128>}]} {
    %c0 = arith.constant 0 : index
    %c0_0 = arith.constant 0 : index
    %0 = vector.load %arg3[%c0, %c0_0] : memref<512x1xf32, #tpu.memory_space<vmem>>, vector<512x1xf32>
    %c0_1 = arith.constant 0 : index
    %c0_2 = arith.constant 0 : index
    %1 = vector.load %arg2[%c0_1, %c0_2] : memref<512x2xf32, #tpu.memory_space<vmem>>, vector<512x1xf32>
    %c0_3 = arith.constant 0 : index
    %c0_4 = arith.constant 0 : index
    %2 = vector.load %arg1[%c0_3, %c0_4] : memref<2x128xf32, #tpu.memory_space<vmem>>, vector<1x128xf32>
    %3 = vector.broadcast %1 : vector<512x1xf32> to vector<512x128xf32>
    %4 = vector.broadcast %2 : vector<1x128xf32> to vector<512x128xf32>
    %5 = arith.mulf %3, %4 : vector<512x128xf32>
    %6 = vector.broadcast %0 : vector<512x1xf32> to vector<512x128xf32>
    %7 = arith.addf %6, %5 : vector<512x128xf32>
    %c0_5 = arith.constant 0 : index
    %c1 = arith.constant 1 : index
    %8 = vector.load %arg2[%c0_5, %c1] : memref<512x2xf32, #tpu.memory_space<vmem>>, vector<512x1xf32>
    %c1_6 = arith.constant 1 : index
    %c0_7 = arith.constant 0 : index
    %9 = vector.load %arg1[%c1_6, %c0_7] : memref<2x128xf32, #tpu.memory_space<vmem>>, vector<1x128xf32>
    %10 = vector.broadcast %8 : vector<512x1xf32> to vector<512x128xf32>
    %11 = vector.broadcast %9 : vector<1x128xf32> to vector<512x128xf32>
    %12 = arith.mulf %10, %11 : vector<512x128xf32>
    %13 = arith.addf %7, %12 : vector<512x128xf32>
    %c0_8 = arith.constant 0 : index
    %c0_9 = arith.constant 0 : index
    %14 = vector.load %arg4[%c0_8, %c0_9] : memref<512x1xf32, #tpu.memory_space<vmem>>, vector<512x1xf32>
    %15 = vector.broadcast %14 : vector<512x1xf32> to vector<512x128xf32>
    %16 = arith.mulf %13, %15 : vector<512x128xf32>
    %cst = arith.constant dense<0.000000e+00> : vector<128xf32>
    %17 = vector.multi_reduction <add>, %16, %cst [0] : vector<512x128xf32> to vector<128xf32>
    %18 = vector.shape_cast %17 : vector<128xf32> to vector<1x128xf32>
    %c0_10 = arith.constant 0 : index
    %c0_11 = arith.constant 0 : index
    %19 = vector.load %arg5[%c0_10, %c0_11] : memref<1x1xf32, #tpu.memory_space<vmem>>, vector<1x1xf32>
    %20 = vector.broadcast %19 : vector<1x1xf32> to vector<1x128xf32>
    %21 = arith.addf %18, %20 : vector<1x128xf32>
    %22 = math.absf %21 : vector<1x128xf32>
    %cst_12 = arith.constant 0.000000e+00 : f32
    %23 = vector.broadcast %cst_12 : f32 to vector<1x128xf32>
    %24 = arith.subf %23, %22 : vector<1x128xf32>
    %25 = math.exp %24 : vector<1x128xf32>
    %cst_13 = arith.constant 1.000000e+00 : f32
    %26 = vector.broadcast %cst_13 : f32 to vector<1x128xf32>
    %27 = arith.addf %26, %25 : vector<1x128xf32>
    %cst_14 = arith.constant 1.000000e+00 : f32
    %28 = vector.broadcast %cst_14 : f32 to vector<1x128xf32>
    %29 = arith.divf %28, %27 : vector<1x128xf32>
    %cst_15 = arith.constant 0.000000e+00 : f32
    %30 = vector.broadcast %cst_15 : f32 to vector<1x128xf32>
    %31 = arith.cmpf oge, %21, %30 : vector<1x128xf32>
    %32 = arith.mulf %25, %29 : vector<1x128xf32>
    %33 = arith.select %31, %29, %32 : vector<1x128xi1>, vector<1x128xf32>
    %c0_16 = arith.constant 0 : index
    %c0_17 = arith.constant 0 : index
    %34 = vector.load %arg6[%c0_16, %c0_17] : memref<1x128xf32, #tpu.memory_space<vmem>>, vector<1x128xf32>
    tpu.vector_store %arg6[%c0_16, %c0_17], %33 {strides = array<i32>} : memref<1x128xf32, #tpu.memory_space<vmem>>, vector<1x128xf32>,
    return
  }
  func.func @transform_0(%arg0: i32) -> (i32, i32) {
    %c0_i32 = arith.constant 0 : i32
    %c0_i32_0 = arith.constant 0 : i32
    return %c0_i32, %arg0 : i32, i32
  }
  func.func @transform_1(%arg0: i32) -> (i32, i32) {
    %c0_i32 = arith.constant 0 : i32
    %c0_i32_0 = arith.constant 0 : i32
    %c0_i32_1 = arith.constant 0 : i32
    return %c0_i32, %c0_i32_0 : i32, i32
  }
  func.func @transform_2(%arg0: i32) -> (i32, i32) {
    %c0_i32 = arith.constant 0 : i32
    %c0_i32_0 = arith.constant 0 : i32
    %c0_i32_1 = arith.constant 0 : i32
    return %c0_i32, %c0_i32_0 : i32, i32
  }
  func.func @transform_3(%arg0: i32) -> (i32, i32) {
    %c0_i32 = arith.constant 0 : i32
    %c0_i32_0 = arith.constant 0 : i32
    %c0_i32_1 = arith.constant 0 : i32
    return %c0_i32, %c0_i32_0 : i32, i32
  }
  func.func @transform_4(%arg0: i32) -> (i32, i32) {
    %c0_i32 = arith.constant 0 : i32
    %c0_i32_0 = arith.constant 0 : i32
    %c0_i32_1 = arith.constant 0 : i32
    return %c0_i32, %c0_i32_0 : i32, i32
  }
  func.func @transform_5(%arg0: i32) -> (i32, i32) {
    %c0_i32 = arith.constant 0 : i32
    %c0_i32_0 = arith.constant 0 : i32
    return %c0_i32, %arg0 : i32, i32
  }
}

</mosaic_0001>

<bundles_post_ra>
// kernel: tpu_custom_call.1
= control target key start
LH: loop header
LB: loop body
LE: loop exit
PB: predicated region body
PF: predicated region fallthrough
CT: control target
= control target key end

     0   :  { %s3334_s0 = inlined_call_operand.vmem [shape: f32[2,128], index: 0, kind: input, shape index: {}]   ;;  %s3335_s1 = inlined_call_operand.vmem [shape: f32[512,2], index: 1, kind: input, shape index: {}]   ;;  %s3336_s2 = inlined_call_operand.vmem [shape: f32[512,1], index: 2, kind: input, shape index: {}]   ;;  %s3337_s3 = inlined_call_operand.vmem [shape: f32[512,1], index: 3, kind: input, shape index: {}]   ;;  %s3338_s4 = inlined_call_operand.<no memory space> [shape: f32[1,1], index: 4, kind: input, shape index: {}]   ;;  %s3339_s5 = inlined_call_operand.hbm [shape: f32[1,128], index: 5, kind: output, shape index: {}]  }
   0x1   :  { %v10_v0 = vstv %s3338_s4 }
   0x2   :  { %11 = vst [vmem:[#allocation2] sm:$0x1] %v10_v0 }
   0x3   :  { %v1945_v1 = vld [vmem:[%s3335_s1 + $0x10] sm:$0xff]  ;;  %v1950_v2 = vld [vmem:[%s3335_s1] sm:$0xff]  ;;  %v3341_v3 = vmov 1   ;;  %v3340_v4 = vmov 0   ;;  %v90_v5 = vld [vmem:[%s3335_s1 + $0x18] sm:$0xff] }
   0x4   :  { %1872 = vset.pattern.permute.xlu0 %v3341_v3  ;;  %1871 = vset.pattern.permute.xlu1 %v3340_v4  ;;  %v92_v6 = vld [vmem:[%s3335_s1 + $0x28] sm:$0xff]  ;;  %v94_v7 = vld [vmem:[%s3335_s1 + $0x38] sm:$0xff] }
   0x5   :  { %164 = vperm.xlu1 %1871, %v1945_v1   ;;  %926 = vperm.xlu0 %1872, %v1950_v2  }
   0x9   :  { %169 = vperm.xlu1 %1871, %v90_v5   ;;  %938 = vperm.xlu0 %1872, %v90_v5  }
   0xd   :  { %179 = vperm.xlu1 %1871, %v92_v6   ;;  %946 = vperm.xlu0 %1872, %v92_v6  }
   0xe   :  { %12 = vsyncpa [#allocation4], 0  ;;  %v96_v8 = vld [vmem:[%s3335_s1 + $0x48] sm:$0xff]  ;;  %v98_v9 = vld [vmem:[%s3335_s1 + $0x58] sm:$0xff] }
   0xf   :  { %v100_v10 = vld [vmem:[%s3335_s1 + $0x68] sm:$0xff]  ;;  %v102_v11 = vld [vmem:[%s3335_s1 + $0x78] sm:$0xff]  ;;  %v2077_v44 = vld [vmem:[%s3335_s1 + $0x20] sm:$0xff] }
  0x10   :  { %v104_v12 = vld [vmem:[%s3335_s1 + $0x88] sm:$0xff]  ;;  %v106_v13 = vld [vmem:[%s3335_s1 + $0x98] sm:$0xff]  ;;  %v2090_v48 = vld [vmem:[%s3335_s1 + $0x30] sm:$0xff] }
  0x11   :  { %189 = vperm.xlu1 %1871, %v94_v7   ;;  %954 = vperm.xlu0 %1872, %v94_v7   ;;  %v108_v14 = vld [vmem:[%s3335_s1 + $0xa8] sm:$0xff]  ;;  %v110_v15 = vld [vmem:[%s3335_s1 + $0xb8] sm:$0xff]  ;;  %v2103_v52 = vld [vmem:[%s3335_s1 + $0x40] sm:$0xff] }
  0x12   :  { %v112_v16 = vld [vmem:[%s3335_s1 + $0xc8] sm:$0xff]  ;;  %v114_v17 = vld [vmem:[%s3335_s1 + $0xd8] sm:$0xff]  ;;  %v2116_v56 = vld [vmem:[%s3335_s1 + $0x50] sm:$0xff] }
  0x13   :  { %v116_v18 = vld [vmem:[%s3335_s1 + $0xe8] sm:$0xff]  ;;  %v118_v19 = vld [vmem:[%s3335_s1 + $0xf8] sm:$0xff]  ;;  %v2129_v60 = vld [vmem:[%s3335_s1 + $0x60] sm:$0xff] }
  0x14   :  { %v120_v20 = vld [vmem:[%s3335_s1 + $0x108] sm:$0xff]  ;;  %v122_v21 = vld [vmem:[%s3335_s1 + $0x118] sm:$0xff]  ;;  %v2142_v0 = vld [vmem:[%s3335_s1 + $0x70] sm:$0xff] }
  0x15   :  { %199 = vperm.xlu1 %1871, %v96_v8   ;;  %962 = vperm.xlu0 %1872, %v96_v8   ;;  %v124_v22 = vld [vmem:[%s3335_s1 + $0x128] sm:$0xff]  ;;  %v126_v23 = vld [vmem:[%s3335_s1 + $0x138] sm:$0xff]  ;;  %v2155_v7 = vld [vmem:[%s3335_s1 + $0x80] sm:$0xff] }
  0x16   :  { %v128_v24 = vld [vmem:[%s3335_s1 + $0x148] sm:$0xff]  ;;  %v130_v25 = vld [vmem:[%s3335_s1 + $0x158] sm:$0xff] }
  0x17   :  { %v132_v26 = vld [vmem:[%s3335_s1 + $0x168] sm:$0xff]  ;;  %v134_v27 = vld [vmem:[%s3335_s1 + $0x178] sm:$0xff] }
  0x18   :  { %v136_v28 = vld [vmem:[%s3335_s1 + $0x188] sm:$0xff]  ;;  %v138_v29 = vld [vmem:[%s3335_s1 + $0x198] sm:$0xff] }
  0x19   :  { %209 = vperm.xlu1 %1871, %v98_v9   ;;  %970 = vperm.xlu0 %1872, %v98_v9   ;;  %v140_v30 = vld [vmem:[%s3335_s1 + $0x1a8] sm:$0xff]  ;;  %v142_v31 = vld [vmem:[%s3335_s1 + $0x1b8] sm:$0xff] }
  0x1a   :  { %v144_v32 = vld [vmem:[%s3335_s1 + $0x1c8] sm:$0xff]  ;;  %v146_v33 = vld [vmem:[%s3335_s1 + $0x1d8] sm:$0xff] }
  0x1b   :  { %v148_v34 = vld [vmem:[%s3335_s1 + $0x1e8] sm:$0xff]  ;;  %v150_v35 = vld [vmem:[%s3335_s1 + $0x1f8] sm:$0xff] }
  0x1c   :  { %v24_v36 = vld [vmem:[%s3336_s2 + $0x8] sm:$0xff]  ;;  %v26_v39 = vld [vmem:[%s3336_s2 + $0x18] sm:$0xff] }
  0x1d   :  { %219 = vperm.xlu1 %1871, %v100_v10   ;;  %978 = vperm.xlu0 %1872, %v100_v10   ;;  %v2064_v40 = vld [vmem:[%s3335_s1 + $0x8] sm:$0xff]  ;;  %v30_v47 = vld [vmem:[%s3336_s2 + $0x38] sm:$0xff] }
  0x1e   :  { %v28_v43 = vld [vmem:[%s3336_s2 + $0x28] sm:$0xff]  ;;  %v34_v55 = vld [vmem:[%s3336_s2 + $0x58] sm:$0xff] }
  0x1f   :  { %v32_v51 = vld [vmem:[%s3336_s2 + $0x48] sm:$0xff]  ;;  %v38_v63 = vld [vmem:[%s3336_s2 + $0x78] sm:$0xff] }
  0x20   :  { %v36_v59 = vld [vmem:[%s3336_s2 + $0x68] sm:$0xff]  ;;  %v42_v10 = vld [vmem:[%s3336_s2 + $0x98] sm:$0xff] }
  0x21   :  { %229 = vperm.xlu1 %1871, %v102_v11   ;;  %986 = vperm.xlu0 %1872, %v102_v11   ;;  %v40_v6 = vld [vmem:[%s3336_s2 + $0x88] sm:$0xff]  ;;  %v2168_v11 = vld [vmem:[%s3335_s1 + $0x90] sm:$0xff] }
  0x25   :  { %239 = vperm.xlu1 %1871, %v104_v12   ;;  %994 = vperm.xlu0 %1872, %v104_v12  }
  0x29   :  { %249 = vperm.xlu1 %1871, %v106_v13   ;;  %1002 = vperm.xlu0 %1872, %v106_v13  }
  0x2d   :  { %259 = vperm.xlu1 %1871, %v108_v14   ;;  %1010 = vperm.xlu0 %1872, %v108_v14   ;;  %v44_v14 = vld [vmem:[%s3336_s2 + $0xa8] sm:$0xff] }
  0x31   :  { %269 = vperm.xlu1 %1871, %v110_v15   ;;  %1018 = vperm.xlu0 %1872, %v110_v15   ;;  %v2181_v15 = vld [vmem:[%s3335_s1 + $0xa0] sm:$0xff] }
  0x35   :  { %279 = vperm.xlu1 %1871, %v112_v16   ;;  %1026 = vperm.xlu0 %1872, %v112_v16  }
  0x39   :  { %289 = vperm.xlu1 %1871, %v114_v17   ;;  %1034 = vperm.xlu0 %1872, %v114_v17  }
  0x3d   :  { %299 = vperm.xlu1 %1871, %v116_v18   ;;  %1042 = vperm.xlu0 %1872, %v116_v18   ;;  %v46_v18 = vld [vmem:[%s3336_s2 + $0xb8] sm:$0xff] }
  0x41   :  { %309 = vperm.xlu1 %1871, %v118_v19   ;;  %1050 = vperm.xlu0 %1872, %v118_v19   ;;  %v2194_v19 = vld [vmem:[%s3335_s1 + $0xb0] sm:$0xff] }
  0x45   :  { %319 = vperm.xlu1 %1871, %v120_v20   ;;  %1058 = vperm.xlu0 %1872, %v120_v20  }
  0x49   :  { %329 = vperm.xlu1 %1871, %v122_v21   ;;  %1066 = vperm.xlu0 %1872, %v122_v21  }
  0x4d   :  { %339 = vperm.xlu1 %1871, %v124_v22   ;;  %1074 = vperm.xlu0 %1872, %v124_v22   ;;  %v48_v22 = vld [vmem:[%s3336_s2 + $0xc8] sm:$0xff] }
  0x51   :  { %349 = vperm.xlu1 %1871, %v126_v23   ;;  %1082 = vperm.xlu0 %1872, %v126_v23   ;;  %v2207_v23 = vld [vmem:[%s3335_s1 + $0xc0] sm:$0xff] }
  0x55   :  { %359 = vperm.xlu1 %1871, %v128_v24   ;;  %1090 = vperm.xlu0 %1872, %v128_v24  }
  0x59   :  { %369 = vperm.xlu1 %1871, %v130_v25   ;;  %1098 = vperm.xlu0 %1872, %v130_v25  }
  0x5d   :  { %379 = vperm.xlu1 %1871, %v132_v26   ;;  %1106 = vperm.xlu0 %1872, %v132_v26   ;;  %v50_v26 = vld [vmem:[%s3336_s2 + $0xd8] sm:$0xff] }
  0x61   :  { %389 = vperm.xlu1 %1871, %v134_v27   ;;  %1114 = vperm.xlu0 %1872, %v134_v27   ;;  %v2220_v27 = vld [vmem:[%s3335_s1 + $0xd0] sm:$0xff] }
  0x65   :  { %399 = vperm.xlu1 %1871, %v136_v28   ;;  %1122 = vperm.xlu0 %1872, %v136_v28  }
  0x69   :  { %409 = vperm.xlu1 %1871, %v138_v29   ;;  %1130 = vperm.xlu0 %1872, %v138_v29  }
  0x6d   :  { %419 = vperm.xlu1 %1871, %v140_v30   ;;  %1138 = vperm.xlu0 %1872, %v140_v30   ;;  %v52_v30 = vld [vmem:[%s3336_s2 + $0xe8] sm:$0xff] }
  0x71   :  { %429 = vperm.xlu1 %1871, %v142_v31   ;;  %1146 = vperm.xlu0 %1872, %v142_v31   ;;  %v2233_v31 = vld [vmem:[%s3335_s1 + $0xe0] sm:$0xff] }
  0x75   :  { %439 = vperm.xlu1 %1871, %v144_v32   ;;  %1154 = vperm.xlu0 %1872, %v144_v32  }
  0x79   :  { %449 = vperm.xlu1 %1871, %v146_v33   ;;  %1162 = vperm.xlu0 %1872, %v146_v33  }
  0x7d   :  { %459 = vperm.xlu1 %1871, %v148_v34   ;;  %1170 = vperm.xlu0 %1872, %v148_v34   ;;  %v54_v34 = vld [vmem:[%s3336_s2 + $0xf8] sm:$0xff] }
  0x81   :  { %469 = vperm.xlu1 %1871, %v150_v35   ;;  %1178 = vperm.xlu0 %1872, %v150_v35   ;;  %v2246_v35 = vld [vmem:[%s3335_s1 + $0xf0] sm:$0xff] }
  0x84   :  { %v2052_v37 = vpop.permute.xlu1 %164  ;;  %v2054_v38 = vpop.permute.xlu0 %926 }
  0x85   :  { %1874 = vset.pattern.permute.xlu0 %v3340_v4  ;;  %547 = vperm.xlu1 %1871, %v24_v36   ;;  %v2311_v4 = vld [vmem:[%s3335_s1 + $0x140] sm:$0xff] }
  0x86   :  { %154 = vperm.xlu0 %1874, %v1950_v2  }
  0x88   :  { %v2066_v41 = vpop.permute.xlu1 %169  ;;  %v2068_v42 = vpop.permute.xlu0 %938 }
  0x89   :  { %557 = vperm.xlu1 %1871, %v26_v39  }
  0x8a   :  { %159 = vperm.xlu0 %1874, %v2064_v40  }
  0x8c   :  { %v2079_v45 = vpop.permute.xlu1 %179  ;;  %v2081_v46 = vpop.permute.xlu0 %946 }
  0x8d   :  { %567 = vperm.xlu1 %1871, %v28_v43   ;;  %v56_v43 = vld [vmem:[%s3336_s2 + $0x108] sm:$0xff] }
  0x8e   :  { %174 = vperm.xlu0 %1874, %v2077_v44  }
  0x90   :  { %v2092_v49 = vpop.permute.xlu1 %189  ;;  %v2094_v50 = vpop.permute.xlu0 %954 }
  0x91   :  { %577 = vperm.xlu1 %1871, %v30_v47   ;;  %v2259_v47 = vld [vmem:[%s3335_s1 + $0x100] sm:$0xff] }
  0x92   :  { %184 = vperm.xlu0 %1874, %v2090_v48  }
  0x94   :  { %v2105_v53 = vpop.permute.xlu1 %199  ;;  %v2107_v54 = vpop.permute.xlu0 %962 }
  0x95   :  { %587 = vperm.xlu1 %1871, %v32_v51  }
  0x96   :  { %194 = vperm.xlu0 %1874, %v2103_v52  }
  0x98   :  { %v2118_v57 = vpop.permute.xlu1 %209  ;;  %v2120_v58 = vpop.permute.xlu0 %970 }
  0x99   :  { %3342 = vst [vmem:[#allocation6_spill] sm:$0xff] %v2120_v58  ;;  %597 = vperm.xlu1 %1871, %v34_v55  }
  0x9a   :  { %204 = vperm.xlu0 %1874, %v2116_v56  }
  0x9c   :  { %v2131_v61 = vpop.permute.xlu1 %219  ;;  %v2133_v62 = vpop.permute.xlu0 %978 }
  0x9d   :  { %3343 = vst [vmem:[#allocation7_spill] sm:$0xff] %v2131_v61  ;;  %3344 = vst [vmem:[#allocation8_spill] sm:$0xff] %v2133_v62  ;;  %607 = vperm.xlu1 %1871, %v36_v59   ;;  %v58_v59 = vld [vmem:[%s3336_s2 + $0x118] sm:$0xff] }
  0x9e   :  { %214 = vperm.xlu0 %1874, %v2129_v60  }
  0xa0   :  { %v2144_v2 = vpop.permute.xlu1 %229  ;;  %v2146_v5 = vpop.permute.xlu0 %986 }
  0xa1   :  { %3345 = vst [vmem:[#allocation9_spill] sm:$0xff] %v2144_v2  ;;  %3346 = vst [vmem:[#allocation10_spill] sm:$0xff] %v2146_v5  ;;  %617 = vperm.xlu1 %1871, %v38_v63   ;;  %v2272_v63 = vld [vmem:[%s3335_s1 + $0x110] sm:$0xff]  ;;  %v1329_v2 = vld [vmem:[%s3337_s3 + $0x80] sm:$0xff] }
  0xa2   :  { %224 = vperm.xlu0 %1874, %v2142_v0  }
  0xa4   :  { %v2157_v8 = vpop.permute.xlu1 %239  ;;  %v2159_v9 = vpop.permute.xlu0 %994 }
  0xa5   :  { %3347 = vst [vmem:[#allocation11_spill] sm:$0xff] %v2157_v8  ;;  %3348 = vst [vmem:[#allocation12_spill] sm:$0xff] %v2159_v9  ;;  %627 = vperm.xlu1 %1871, %v40_v6  }
  0xa6   :  { %234 = vperm.xlu0 %1874, %v2155_v7  }
  0xa8   :  { %v2170_v12 = vpop.permute.xlu1 %249  ;;  %v2172_v13 = vpop.permute.xlu0 %1002 }
  0xa9   :  { %3349 = vst [vmem:[#allocation13_spill] sm:$0xff] %v2170_v12  ;;  %3350 = vst [vmem:[#allocation14_spill] sm:$0xff] %v2172_v13  ;;  %637 = vperm.xlu1 %1871, %v42_v10  }
  0xaa   :  { %244 = vperm.xlu0 %1874, %v2168_v11  }
  0xac   :  { %v2183_v16 = vpop.permute.xlu1 %259  ;;  %v2185_v17 = vpop.permute.xlu0 %1010 }
  0xad   :  { %3351 = vst [vmem:[#allocation15_spill] sm:$0xff] %v2183_v16  ;;  %3352 = vst [vmem:[#allocation16_spill] sm:$0xff] %v2185_v17  ;;  %647 = vperm.xlu1 %1871, %v44_v14   ;;  %v60_v14 = vld [vmem:[%s3336_s2 + $0x128] sm:$0xff] }
  0xae   :  { %254 = vperm.xlu0 %1874, %v2181_v15  }
  0xb0   :  { %v2196_v20 = vpop.permute.xlu1 %269  ;;  %v2198_v21 = vpop.permute.xlu0 %1018 }
  0xb1   :  { %3353 = vst [vmem:[#allocation17_spill] sm:$0xff] %v2196_v20  ;;  %3354 = vst [vmem:[#allocation18_spill] sm:$0xff] %v2198_v21  ;;  %657 = vperm.xlu1 %1871, %v46_v18   ;;  %v2285_v18 = vld [vmem:[%s3335_s1 + $0x120] sm:$0xff] }
  0xb2   :  { %264 = vperm.xlu0 %1874, %v2194_v19  }
  0xb4   :  { %v2209_v24 = vpop.permute.xlu1 %279  ;;  %v2211_v25 = vpop.permute.xlu0 %1026 }
  0xb5   :  { %3355 = vst [vmem:[#allocation19_spill] sm:$0xff] %v2209_v24  ;;  %3356 = vst [vmem:[#allocation20_spill] sm:$0xff] %v2211_v25  ;;  %667 = vperm.xlu1 %1871, %v48_v22   ;;  %v3395_v25 = vmov 1   ;;  %v27_v24 = vld [vmem:[%s3336_s2 + $0x20] sm:$0xff] }
  0xb6   :  { %274 = vperm.xlu0 %1874, %v2207_v23  }
  0xb8   :  { %v2222_v28 = vpop.permute.xlu1 %289  ;;  %v2224_v29 = vpop.permute.xlu0 %1034 }
  0xb9   :  { %3357 = vst [vmem:[#allocation21_spill] sm:$0xff] %v2222_v28  ;;  %3358 = vst [vmem:[#allocation22_spill] sm:$0xff] %v2224_v29  ;;  %677 = vperm.xlu1 %1871, %v50_v26  }
  0xba   :  { %284 = vperm.xlu0 %1874, %v2220_v27  }
  0xbc   :  { %v2235_v32 = vpop.permute.xlu1 %299  ;;  %v2237_v33 = vpop.permute.xlu0 %1042 }
  0xbd   :  { %3359 = vst [vmem:[#allocation23_spill] sm:$0xff] %v2235_v32  ;;  %3360 = vst [vmem:[#allocation24_spill] sm:$0xff] %v2237_v33  ;;  %687 = vperm.xlu1 %1871, %v52_v30   ;;  %v62_v30 = vld [vmem:[%s3336_s2 + $0x138] sm:$0xff] }
  0xbe   :  { %294 = vperm.xlu0 %1874, %v2233_v31  }
  0xc0   :  { %v2248_v36 = vpop.permute.xlu1 %309  ;;  %v2250_v39 = vpop.permute.xlu0 %1050 }
  0xc1   :  { %3361 = vst [vmem:[#allocation25_spill] sm:$0xff] %v2248_v36  ;;  %3362 = vst [vmem:[#allocation26_spill] sm:$0xff] %v2250_v39  ;;  %697 = vperm.xlu1 %1871, %v54_v34   ;;  %v2298_v34 = vld [vmem:[%s3335_s1 + $0x130] sm:$0xff] }
  0xc2   :  { %304 = vperm.xlu0 %1874, %v2246_v35  }
  0xc4   :  { %v2261_v51 = vpop.permute.xlu1 %319  ;;  %v2263_v55 = vpop.permute.xlu0 %1058 }
  0xc5   :  { %3363 = vst [vmem:[#allocation27_spill] sm:$0xff] %v2261_v51  ;;  %3364 = vst [vmem:[#allocation28_spill] sm:$0xff] %v2263_v55  ;;  %707 = vperm.xlu1 %1871, %v56_v43  }
  0xc6   :  { %314 = vperm.xlu0 %1874, %v2259_v47  }
  0xc8   :  { %v2274_v6 = vpop.permute.xlu1 %329  ;;  %v2276_v10 = vpop.permute.xlu0 %1066 }
  0xc9   :  { %3365 = vst [vmem:[#allocation29_spill] sm:$0xff] %v2274_v6  ;;  %3366 = vst [vmem:[#allocation30_spill] sm:$0xff] %v2276_v10  ;;  %717 = vperm.xlu1 %1871, %v58_v59  }
  0xca   :  { %324 = vperm.xlu0 %1874, %v2272_v63  }
  0xcc   :  { %v2287_v22 = vpop.permute.xlu1 %339  ;;  %v2289_v26 = vpop.permute.xlu0 %1074 }
  0xcd   :  { %3367 = vst [vmem:[#allocation31_spill] sm:$0xff] %v2287_v22  ;;  %3368 = vst [vmem:[#allocation32_spill] sm:$0xff] %v2289_v26  ;;  %727 = vperm.xlu1 %1871, %v60_v14   ;;  %v64_v14 = vld [vmem:[%s3336_s2 + $0x148] sm:$0xff] }
  0xce   :  { %334 = vperm.xlu0 %1874, %v2285_v18  }
  0xd0   :  { %v2300_v43 = vpop.permute.xlu1 %349  ;;  %v2302_v59 = vpop.permute.xlu0 %1082 }
  0xd1   :  { %3369 = vst [vmem:[#allocation33_spill] sm:$0xff] %v2300_v43  ;;  %3370 = vst [vmem:[#allocation34_spill] sm:$0xff] %v2302_v59  ;;  %737 = vperm.xlu1 %1871, %v62_v30   ;;  %v66_v30 = vld [vmem:[%s3336_s2 + $0x158] sm:$0xff]  ;;  %v2324_v59 = vld [vmem:[%s3335_s1 + $0x150] sm:$0xff] }
  0xd2   :  { %344 = vperm.xlu0 %1874, %v2298_v34  }
  0xd4   :  { %v2313_v3 = vpop.permute.xlu1 %359  ;;  %v2315_v26 = vpop.permute.xlu0 %1090 }
  0xd5   :  { %3371 = vst [vmem:[#allocation35_spill] sm:$0xff] %v2313_v3  ;;  %3372 = vst [vmem:[#allocation36_spill] sm:$0xff] %v2315_v26  ;;  %747 = vperm.xlu1 %1871, %v64_v14   ;;  %v68_v14 = vld [vmem:[%s3336_s2 + $0x168] sm:$0xff]  ;;  %v2337_v26 = vld [vmem:[%s3335_s1 + $0x160] sm:$0xff] }
  0xd6   :  { %354 = vperm.xlu0 %1874, %v2311_v4  }
  0xd8   :  { %v2326_v43 = vpop.permute.xlu1 %369  ;;  %v2328_v22 = vpop.permute.xlu0 %1098 }
  0xd9   :  { %3373 = vst [vmem:[#allocation37_spill] sm:$0xff] %v2326_v43  ;;  %3374 = vst [vmem:[#allocation38_spill] sm:$0xff] %v2328_v22  ;;  %757 = vperm.xlu1 %1871, %v66_v30   ;;  %v70_v30 = vld [vmem:[%s3336_s2 + $0x178] sm:$0xff]  ;;  %v2350_v22 = vld [vmem:[%s3335_s1 + $0x170] sm:$0xff] }
  0xda   :  { %364 = vperm.xlu0 %1874, %v2324_v59  }
  0xdc   :  { %v2339_v3 = vpop.permute.xlu1 %379  ;;  %v2341_v10 = vpop.permute.xlu0 %1106 }
  0xdd   :  { %3375 = vst [vmem:[#allocation39_spill] sm:$0xff] %v2339_v3  ;;  %3376 = vst [vmem:[#allocation40_spill] sm:$0xff] %v2341_v10  ;;  %767 = vperm.xlu1 %1871, %v68_v14   ;;  %v72_v14 = vld [vmem:[%s3336_s2 + $0x188] sm:$0xff]  ;;  %v2363_v10 = vld [vmem:[%s3335_s1 + $0x180] sm:$0xff] }
  0xde   :  { %374 = vperm.xlu0 %1874, %v2337_v26  }
  0xe0   :  { %v2352_v43 = vpop.permute.xlu1 %389  ;;  %v2354_v6 = vpop.permute.xlu0 %1114 }
  0xe1   :  { %3377 = vst [vmem:[#allocation41_spill] sm:$0xff] %v2352_v43  ;;  %3378 = vst [vmem:[#allocation42_spill] sm:$0xff] %v2354_v6  ;;  %777 = vperm.xlu1 %1871, %v70_v30   ;;  %v74_v30 = vld [vmem:[%s3336_s2 + $0x198] sm:$0xff]  ;;  %v2376_v6 = vld [vmem:[%s3335_s1 + $0x190] sm:$0xff] }
  0xe2   :  { %384 = vperm.xlu0 %1874, %v2350_v22  }
  0xe4   :  { %v2365_v3 = vpop.permute.xlu1 %399  ;;  %v2367_v55 = vpop.permute.xlu0 %1122 }
  0xe5   :  { %3379 = vst [vmem:[#allocation43_spill] sm:$0xff] %v2365_v3  ;;  %3380 = vst [vmem:[#allocation44_spill] sm:$0xff] %v2367_v55  ;;  %787 = vperm.xlu1 %1871, %v72_v14   ;;  %v76_v14 = vld [vmem:[%s3336_s2 + $0x1a8] sm:$0xff]  ;;  %v2389_v55 = vld [vmem:[%s3335_s1 + $0x1a0] sm:$0xff] }
  0xe6   :  { %394 = vperm.xlu0 %1874, %v2363_v10  }
  0xe8   :  { %v2378_v43 = vpop.permute.xlu1 %409  ;;  %v2380_v51 = vpop.permute.xlu0 %1130 }
  0xe9   :  { %3381 = vst [vmem:[#allocation45_spill] sm:$0xff] %v2378_v43  ;;  %3382 = vst [vmem:[#allocation46_spill] sm:$0xff] %v2380_v51  ;;  %797 = vperm.xlu1 %1871, %v74_v30   ;;  %v78_v30 = vld [vmem:[%s3336_s2 + $0x1b8] sm:$0xff]  ;;  %v2402_v51 = vld [vmem:[%s3335_s1 + $0x1b0] sm:$0xff] }
  0xea   :  { %404 = vperm.xlu0 %1874, %v2376_v6  }
  0xec   :  { %v2391_v3 = vpop.permute.xlu1 %419  ;;  %v2393_v39 = vpop.permute.xlu0 %1138 }
  0xed   :  { %3383 = vst [vmem:[#allocation47_spill] sm:$0xff] %v2391_v3  ;;  %3384 = vst [vmem:[#allocation48_spill] sm:$0xff] %v2393_v39  ;;  %807 = vperm.xlu1 %1871, %v76_v14   ;;  %v80_v14 = vld [vmem:[%s3336_s2 + $0x1c8] sm:$0xff]  ;;  %v2415_v39 = vld [vmem:[%s3335_s1 + $0x1c0] sm:$0xff] }
  0xee   :  { %414 = vperm.xlu0 %1874, %v2389_v55  }
  0xf0   :  { %v2404_v43 = vpop.permute.xlu1 %429  ;;  %v2406_v36 = vpop.permute.xlu0 %1146 }
  0xf1   :  { %3385 = vst [vmem:[#allocation49_spill] sm:$0xff] %v2404_v43  ;;  %3386 = vst [vmem:[#allocation50_spill] sm:$0xff] %v2406_v36  ;;  %817 = vperm.xlu1 %1871, %v78_v30   ;;  %v82_v30 = vld [vmem:[%s3336_s2 + $0x1d8] sm:$0xff]  ;;  %v2428_v36 = vld [vmem:[%s3335_s1 + $0x1d0] sm:$0xff] }
  0xf2   :  { %424 = vperm.xlu0 %1874, %v2402_v51  }
  0xf4   :  { %v2417_v3 = vpop.permute.xlu1 %439  ;;  %v2419_v33 = vpop.permute.xlu0 %1154 }
  0xf5   :  { %3387 = vst [vmem:[#allocation51_spill] sm:$0xff] %v2417_v3  ;;  %3388 = vst [vmem:[#allocation52_spill] sm:$0xff] %v2419_v33  ;;  %827 = vperm.xlu1 %1871, %v80_v14   ;;  %v84_v14 = vld [vmem:[%s3336_s2 + $0x1e8] sm:$0xff]  ;;  %v2441_v33 = vld [vmem:[%s3335_s1 + $0x1e0] sm:$0xff] }
  0xf6   :  { %434 = vperm.xlu0 %1874, %v2415_v39  }
  0xf8   :  { %v2430_v43 = vpop.permute.xlu1 %449  ;;  %v2432_v32 = vpop.permute.xlu0 %1162 }
  0xf9   :  { %3389 = vst [vmem:[#allocation53_spill] sm:$0xff] %v2430_v43  ;;  %3390 = vst [vmem:[#allocation54_spill] sm:$0xff] %v2432_v32  ;;  %837 = vperm.xlu1 %1871, %v82_v30   ;;  %v86_v30 = vld [vmem:[%s3336_s2 + $0x1f8] sm:$0xff]  ;;  %v2454_v32 = vld [vmem:[%s3335_s1 + $0x1f0] sm:$0xff] }
  0xfa   :  { %444 = vperm.xlu0 %1874, %v2428_v36  }
  0xfc   :  { %v2443_v3 = vpop.permute.xlu1 %459  ;;  %v2445_v29 = vpop.permute.xlu0 %1170 }
  0xfd   :  { %3391 = vst [vmem:[#allocation55_spill] sm:$0xff] %v2443_v3  ;;  %3392 = vst [vmem:[#allocation56_spill] sm:$0xff] %v2445_v29  ;;  %847 = vperm.xlu1 %1871, %v84_v14   ;;  %v23_v14 = vld [vmem:[%s3336_s2] sm:$0xff] }
  0xfe   :  { %454 = vperm.xlu0 %1874, %v2441_v33  }
 0x100   :  { %v2456_v43 = vpop.permute.xlu1 %469  ;;  %v2458_v28 = vpop.permute.xlu0 %1178 }
 0x101   :  { %3393 = vst [vmem:[#allocation57_spill] sm:$0xff] %v2456_v43  ;;  %3394 = vst [vmem:[#allocation58_spill] sm:$0xff] %v2458_v28  ;;  %857 = vperm.xlu1 %1871, %v86_v30   ;;  %v25_v28 = vld [vmem:[%s3336_s2 + $0x10] sm:$0xff] }
 0x102   :  { %464 = vperm.xlu0 %1874, %v2454_v32  }
 0x104   :  { %v2464_v29 = vpop.permute.xlu1 %547 }
 0x105   :  { %v2466_v3 = vpop.permute.xlu0 %154  ;;  %1873 = vset.pattern.permute.xlu1 %v3395_v25 }
 0x106   :  { %930 = vperm.xlu1 %1873, %v2064_v40   ;;  %542 = vperm.xlu0 %1874, %v23_v14   ;;  %v29_v40 = vld [vmem:[%s3336_s2 + $0x30] sm:$0xff] }
 0x108   :  { %v2473_v30 = vpop.permute.xlu1 %557 }
 0x109   :  { %v2475_v43 = vpop.permute.xlu0 %159 }
 0x10a   :  { %934 = vperm.xlu1 %1873, %v1945_v1   ;;  %552 = vperm.xlu0 %1874, %v25_v28   ;;  %v31_v1 = vld [vmem:[%s3336_s2 + $0x40] sm:$0xff] }
 0x10c   :  { %v2481_v21 = vpop.permute.xlu1 %567 }
 0x10d   :  { %v2483_v25 = vpop.permute.xlu0 %174 }
 0x10e   :  { %942 = vperm.xlu1 %1873, %v2077_v44   ;;  %562 = vperm.xlu0 %1874, %v27_v24   ;;  %v33_v44 = vld [vmem:[%s3336_s2 + $0x50] sm:$0xff] }
 0x110   :  { %v2489_v14 = vpop.permute.xlu1 %577 }
 0x111   :  { %v2491_v20 = vpop.permute.xlu0 %184 }
 0x112   :  { %950 = vperm.xlu1 %1873, %v2090_v48   ;;  %572 = vperm.xlu0 %1874, %v29_v40   ;;  %v35_v48 = vld [vmem:[%s3336_s2 + $0x60] sm:$0xff] }
 0x114   :  { %v2497_v28 = vpop.permute.xlu1 %587 }
 0x115   :  { %v2499_v17 = vpop.permute.xlu0 %194 }
 0x116   :  { %958 = vperm.xlu1 %1873, %v2103_v52   ;;  %582 = vperm.xlu0 %1874, %v31_v1   ;;  %v37_v52 = vld [vmem:[%s3336_s2 + $0x70] sm:$0xff] }
 0x118   :  { %v2505_v24 = vpop.permute.xlu1 %597 }
 0x119   :  { %3396 = vst [vmem:[#allocation59_spill] sm:$0xff] %v2505_v24  ;;  %v2507_v16 = vpop.permute.xlu0 %204 }
 0x11a   :  { %966 = vperm.xlu1 %1873, %v2116_v56   ;;  %592 = vperm.xlu0 %1874, %v33_v44   ;;  %v39_v56 = vld [vmem:[%s3336_s2 + $0x80] sm:$0xff] }
 0x11c   :  { %v2513_v40 = vpop.permute.xlu1 %607 }
 0x11d   :  { %3397 = vst [vmem:[#allocation60_spill] sm:$0xff] %v2513_v40  ;;  %v2515_v13 = vpop.permute.xlu0 %214 }
 0x11e   :  { %3398 = vst [vmem:[#allocation61_spill] sm:$0xff] %v2515_v13  ;;  %974 = vperm.xlu1 %1873, %v2129_v60   ;;  %602 = vperm.xlu0 %1874, %v35_v48   ;;  %v41_v60 = vld [vmem:[%s3336_s2 + $0x90] sm:$0xff] }
 0x120   :  { %v2521_v1 = vpop.permute.xlu1 %617 }
 0x121   :  { %3399 = vst [vmem:[#allocation62_spill] sm:$0xff] %v2521_v1  ;;  %v2523_v12 = vpop.permute.xlu0 %224 }
 0x122   :  { %3400 = vst [vmem:[#allocation63_spill] sm:$0xff] %v2523_v12  ;;  %982 = vperm.xlu1 %1873, %v2142_v0   ;;  %612 = vperm.xlu0 %1874, %v37_v52   ;;  %v43_v0 = vld [vmem:[%s3336_s2 + $0xa0] sm:$0xff]  ;;  %v1331_v12 = vld [vmem:[%s3337_s3 + $0x90] sm:$0xff] }
 0x124   :  { %v2529_v44 = vpop.permute.xlu1 %627 }
 0x125   :  { %3401 = vst [vmem:[#allocation64_spill] sm:$0xff] %v2529_v44  ;;  %v2531_v9 = vpop.permute.xlu0 %234 }
 0x126   :  { %3402 = vst [vmem:[#allocation65_spill] sm:$0xff] %v2531_v9  ;;  %990 = vperm.xlu1 %1873, %v2155_v7   ;;  %622 = vperm.xlu0 %1874, %v39_v56   ;;  %v45_v7 = vld [vmem:[%s3336_s2 + $0xb0] sm:$0xff] }
 0x127   :  { %v1327_v9 = vld [vmem:[%s3337_s3 + $0x70] sm:$0xff] }
 0x128   :  { %v2537_v48 = vpop.permute.xlu1 %637 }
 0x129   :  { %3403 = vst [vmem:[#allocation66_spill] sm:$0xff] %v2537_v48  ;;  %v2539_v8 = vpop.permute.xlu0 %244 }
 0x12a   :  { %3404 = vst [vmem:[#allocation67_spill] sm:$0xff] %v2539_v8  ;;  %998 = vperm.xlu1 %1873, %v2168_v11   ;;  %632 = vperm.xlu0 %1874, %v41_v60   ;;  %v47_v11 = vld [vmem:[%s3336_s2 + $0xc0] sm:$0xff] }
 0x12b   :  { %v1325_v8 = vld [vmem:[%s3337_s3 + $0x60] sm:$0xff] }
 0x12c   :  { %v2545_v52 = vpop.permute.xlu1 %647 }
 0x12d   :  { %3405 = vst [vmem:[#allocation68_spill] sm:$0xff] %v2545_v52  ;;  %v2547_v44 = vpop.permute.xlu0 %254 }
 0x12e   :  { %3406 = vst [vmem:[#allocation69_spill] sm:$0xff] %v2547_v44  ;;  %1006 = vperm.xlu1 %1873, %v2181_v15   ;;  %642 = vperm.xlu0 %1874, %v43_v0   ;;  %v49_v15 = vld [vmem:[%s3336_s2 + $0xd0] sm:$0xff] }
 0x130   :  { %v2553_v56 = vpop.permute.xlu1 %657 }
 0x131   :  { %3407 = vst [vmem:[#allocation70_spill] sm:$0xff] %v2553_v56  ;;  %v2555_v48 = vpop.permute.xlu0 %264 }
 0x132   :  { %3408 = vst [vmem:[#allocation71_spill] sm:$0xff] %v2555_v48  ;;  %1014 = vperm.xlu1 %1873, %v2194_v19   ;;  %652 = vperm.xlu0 %1874, %v45_v7   ;;  %v51_v19 = vld [vmem:[%s3336_s2 + $0xe0] sm:$0xff]  ;;  %v1323_v48 = vld [vmem:[%s3337_s3 + $0x50] sm:$0xff] }
 0x134   :  { %v2561_v60 = vpop.permute.xlu1 %667 }
 0x135   :  { %3409 = vst [vmem:[#allocation72_spill] sm:$0xff] %v2561_v60  ;;  %v2563_v52 = vpop.permute.xlu0 %274 }
 0x136   :  { %3410 = vst [vmem:[#allocation73_spill] sm:$0xff] %v2563_v52  ;;  %1022 = vperm.xlu1 %1873, %v2207_v23   ;;  %662 = vperm.xlu0 %1874, %v47_v11   ;;  %v53_v23 = vld [vmem:[%s3336_s2 + $0xf0] sm:$0xff] }
 0x138   :  { %v2569_v0 = vpop.permute.xlu1 %677 }
 0x139   :  { %3411 = vst [vmem:[#allocation74_spill] sm:$0xff] %v2569_v0  ;;  %v2571_v56 = vpop.permute.xlu0 %284 }
 0x13a   :  { %3412 = vst [vmem:[#allocation75_spill] sm:$0xff] %v2571_v56  ;;  %1030 = vperm.xlu1 %1873, %v2220_v27   ;;  %672 = vperm.xlu0 %1874, %v49_v15   ;;  %v55_v27 = vld [vmem:[%s3336_s2 + $0x100] sm:$0xff] }
 0x13b   :  { %v1321_v56 = vld [vmem:[%s3337_s3 + $0x40] sm:$0xff] }
 0x13c   :  { %v2577_v7 = vpop.permute.xlu1 %687 }
 0x13d   :  { %3413 = vst [vmem:[#allocation76_spill] sm:$0xff] %v2577_v7  ;;  %v2579_v60 = vpop.permute.xlu0 %294 }
 0x13e   :  { %3414 = vst [vmem:[#allocation77_spill] sm:$0xff] %v2579_v60  ;;  %1038 = vperm.xlu1 %1873, %v2233_v31   ;;  %682 = vperm.xlu0 %1874, %v51_v19   ;;  %v57_v31 = vld [vmem:[%s3336_s2 + $0x110] sm:$0xff] }
 0x140   :  { %v2585_v11 = vpop.permute.xlu1 %697 }
 0x141   :  { %3415 = vst [vmem:[#allocation78_spill] sm:$0xff] %v2585_v11  ;;  %v2587_v0 = vpop.permute.xlu0 %304 }
 0x142   :  { %3416 = vst [vmem:[#allocation79_spill] sm:$0xff] %v2587_v0  ;;  %1046 = vperm.xlu1 %1873, %v2246_v35   ;;  %692 = vperm.xlu0 %1874, %v53_v23   ;;  %v59_v35 = vld [vmem:[%s3336_s2 + $0x120] sm:$0xff] }
 0x144   :  { %v2593_v15 = vpop.permute.xlu1 %707 }
 0x145   :  { %3417 = vst [vmem:[#allocation80_spill] sm:$0xff] %v2593_v15  ;;  %v2595_v7 = vpop.permute.xlu0 %314 }
 0x146   :  { %1054 = vperm.xlu1 %1873, %v2259_v47   ;;  %702 = vperm.xlu0 %1874, %v55_v27   ;;  %v61_v47 = vld [vmem:[%s3336_s2 + $0x130] sm:$0xff] }
 0x148   :  { %v2601_v19 = vpop.permute.xlu1 %717 }
 0x149   :  { %3418 = vst [vmem:[#allocation81_spill] sm:$0xff] %v2601_v19  ;;  %v2603_v11 = vpop.permute.xlu0 %324 }
 0x14a   :  { %1062 = vperm.xlu1 %1873, %v2272_v63   ;;  %712 = vperm.xlu0 %1874, %v57_v31   ;;  %v63_v63 = vld [vmem:[%s3336_s2 + $0x140] sm:$0xff] }
 0x14c   :  { %v2609_v23 = vpop.permute.xlu1 %727 }
 0x14d   :  { %3419 = vst [vmem:[#allocation82_spill] sm:$0xff] %v2609_v23  ;;  %v2611_v15 = vpop.permute.xlu0 %334 }
 0x14e   :  { %1070 = vperm.xlu1 %1873, %v2285_v18   ;;  %722 = vperm.xlu0 %1874, %v59_v35   ;;  %v65_v18 = vld [vmem:[%s3336_s2 + $0x150] sm:$0xff] }
 0x150   :  { %v2617_v27 = vpop.permute.xlu1 %737 }
 0x151   :  { %3420 = vst [vmem:[#allocation83_spill] sm:$0xff] %v2617_v27  ;;  %v2619_v19 = vpop.permute.xlu0 %344 }
 0x152   :  { %1078 = vperm.xlu1 %1873, %v2298_v34   ;;  %732 = vperm.xlu0 %1874, %v61_v47   ;;  %v67_v34 = vld [vmem:[%s3336_s2 + $0x160] sm:$0xff] }
 0x154   :  { %v2625_v31 = vpop.permute.xlu1 %747 }
 0x155   :  { %3421 = vst [vmem:[#allocation84_spill] sm:$0xff] %v2625_v31  ;;  %v2627_v23 = vpop.permute.xlu0 %354 }
 0x156   :  { %1086 = vperm.xlu1 %1873, %v2311_v4   ;;  %742 = vperm.xlu0 %1874, %v63_v63   ;;  %v69_v4 = vld [vmem:[%s3336_s2 + $0x170] sm:$0xff] }
 0x158   :  { %v2633_v35 = vpop.permute.xlu1 %757 }
 0x159   :  { %3422 = vst [vmem:[#allocation85_spill] sm:$0xff] %v2633_v35  ;;  %v2635_v27 = vpop.permute.xlu0 %364 }
 0x15a   :  { %1094 = vperm.xlu1 %1873, %v2324_v59   ;;  %752 = vperm.xlu0 %1874, %v65_v18   ;;  %v71_v59 = vld [vmem:[%s3336_s2 + $0x180] sm:$0xff] }
 0x15c   :  { %v2641_v47 = vpop.permute.xlu1 %767 }
 0x15d   :  { %3423 = vst [vmem:[#allocation86_spill] sm:$0xff] %v2641_v47  ;;  %v2643_v31 = vpop.permute.xlu0 %374 }
 0x15e   :  { %1102 = vperm.xlu1 %1873, %v2337_v26   ;;  %762 = vperm.xlu0 %1874, %v67_v34   ;;  %v73_v26 = vld [vmem:[%s3336_s2 + $0x190] sm:$0xff] }
 0x160   :  { %v2649_v63 = vpop.permute.xlu1 %777 }
 0x161   :  { %3424 = vst [vmem:[#allocation87_spill] sm:$0xff] %v2649_v63  ;;  %v2651_v35 = vpop.permute.xlu0 %384 }
 0x162   :  { %1110 = vperm.xlu1 %1873, %v2350_v22   ;;  %772 = vperm.xlu0 %1874, %v69_v4   ;;  %v75_v22 = vld [vmem:[%s3336_s2 + $0x1a0] sm:$0xff] }
 0x164   :  { %v2657_v18 = vpop.permute.xlu1 %787 }
 0x165   :  { %3425 = vst [vmem:[#allocation88_spill] sm:$0xff] %v2657_v18  ;;  %v2659_v47 = vpop.permute.xlu0 %394 }
 0x166   :  { %1118 = vperm.xlu1 %1873, %v2363_v10   ;;  %782 = vperm.xlu0 %1874, %v71_v59   ;;  %v77_v10 = vld [vmem:[%s3336_s2 + $0x1b0] sm:$0xff] }
 0x168   :  { %v2665_v34 = vpop.permute.xlu1 %797 }
 0x169   :  { %3426 = vst [vmem:[#allocation89_spill] sm:$0xff] %v2665_v34  ;;  %v2667_v63 = vpop.permute.xlu0 %404 }
 0x16a   :  { %1126 = vperm.xlu1 %1873, %v2376_v6   ;;  %792 = vperm.xlu0 %1874, %v73_v26   ;;  %v79_v6 = vld [vmem:[%s3336_s2 + $0x1c0] sm:$0xff] }
 0x16c   :  { %v2673_v4 = vpop.permute.xlu1 %807 }
 0x16d   :  { %3427 = vst [vmem:[#allocation90_spill] sm:$0xff] %v2673_v4  ;;  %v2675_v18 = vpop.permute.xlu0 %414 }
 0x16e   :  { %1134 = vperm.xlu1 %1873, %v2389_v55   ;;  %802 = vperm.xlu0 %1874, %v75_v22   ;;  %v81_v55 = vld [vmem:[%s3336_s2 + $0x1d0] sm:$0xff] }
 0x170   :  { %v2681_v59 = vpop.permute.xlu1 %817 }
 0x171   :  { %3428 = vst [vmem:[#allocation91_spill] sm:$0xff] %v2681_v59  ;;  %v2683_v34 = vpop.permute.xlu0 %424 }
 0x172   :  { %1142 = vperm.xlu1 %1873, %v2402_v51   ;;  %812 = vperm.xlu0 %1874, %v77_v10   ;;  %v83_v51 = vld [vmem:[%s3336_s2 + $0x1e0] sm:$0xff] }
 0x174   :  { %v2689_v26 = vpop.permute.xlu1 %827 }
 0x175   :  { %3429 = vst [vmem:[#allocation92_spill] sm:$0xff] %v2689_v26  ;;  %v2691_v4 = vpop.permute.xlu0 %434 }
 0x176   :  { %1150 = vperm.xlu1 %1873, %v2415_v39   ;;  %822 = vperm.xlu0 %1874, %v79_v6   ;;  %v85_v39 = vld [vmem:[%s3336_s2 + $0x1f0] sm:$0xff] }
 0x178   :  { %v2697_v22 = vpop.permute.xlu1 %837 }
 0x179   :  { %3430 = vst [vmem:[#allocation93_spill] sm:$0xff] %v2697_v22  ;;  %v2699_v59 = vpop.permute.xlu0 %444 }
 0x17a   :  { %1158 = vperm.xlu1 %1873, %v2428_v36   ;;  %832 = vperm.xlu0 %1874, %v81_v55   ;;  %v1314_v36 = vld [vmem:[%s3337_s3 + $0x8] sm:$0xff] }
 0x17c   :  { %v2705_v10 = vpop.permute.xlu1 %847 }
 0x17d   :  { %3431 = vst [vmem:[#allocation94_spill] sm:$0xff] %v2705_v10  ;;  %v2707_v26 = vpop.permute.xlu0 %454  ;;  %v3433_v10 = vmov 0  }
 0x17e   :  { %1166 = vperm.xlu1 %1873, %v2441_v33   ;;  %842 = vperm.xlu0 %1874, %v83_v51   ;;  %v1313_v33 = vld [vmem:[%s3337_s3] sm:$0xff] }
 0x180   :  { %v2713_v6 = vpop.permute.xlu1 %857 }
 0x181   :  { %3432 = vst [vmem:[#allocation95_spill] sm:$0xff] %v2713_v6  ;;  %v2715_v22 = vpop.permute.xlu0 %464 }
 0x182   :  { %1174 = vperm.xlu1 %1873, %v2454_v32   ;;  %852 = vperm.xlu0 %1874, %v85_v39   ;;  %v1317_v32 = vld [vmem:[%s3337_s3 + $0x20] sm:$0xff]  ;;  %v1315_v39 = vld [vmem:[%s3337_s3 + $0x10] sm:$0xff] }
 0x185   :  { %v2724_v55 = vpop.permute.xlu1 %930  ;;  %v2726_v51 = vpop.permute.xlu0 %542 }
 0x186   :  { %1875 = vset.pattern.permute.xlu1 %v3433_v10  ;;  %1384 = vperm.xlu0 %1874, %v1314_v36   ;;  %v1319_v10 = vld [vmem:[%s3337_s3 + $0x30] sm:$0xff]  ;;  %v1316_v36 = vld [vmem:[%s3337_s3 + $0x18] sm:$0xff] }
 0x187   :  { %1379 = vperm.xlu1 %1875, %v1313_v33  }
 0x189   :  { %v2735_v6 = vpop.permute.xlu1 %934  ;;  %v2737_v0 = vpop.permute.xlu0 %552 }
 0x18a   :  { %1399 = vperm.xlu0 %1874, %v1317_v32   ;;  %v1318_v32 = vld [vmem:[%s3337_s3 + $0x28] sm:$0xff] }
 0x18b   :  { %1389 = vperm.xlu1 %1875, %v1315_v39  }
 0x18d   :  { %v2745_v33 = vpop.permute.xlu1 %942  ;;  %v2747_v60 = vpop.permute.xlu0 %562 }
 0x18e   :  { %1409 = vperm.xlu0 %1874, %v1319_v10   ;;  %v1320_v10 = vld [vmem:[%s3337_s3 + $0x38] sm:$0xff] }
 0x18f   :  { %1394 = vperm.xlu1 %1875, %v1316_v36  }
 0x191   :  { %v2755_v39 = vpop.permute.xlu1 %950  ;;  %v2757_v52 = vpop.permute.xlu0 %572 }
 0x192   :  { %1419 = vperm.xlu0 %1874, %v1321_v56   ;;  %v1322_v56 = vld [vmem:[%s3337_s3 + $0x48] sm:$0xff] }
 0x193   :  { %1404 = vperm.xlu1 %1875, %v1318_v32  }
 0x195   :  { %v2765_v36 = vpop.permute.xlu1 %958  ;;  %v2767_v44 = vpop.permute.xlu0 %582 }
 0x196   :  { %1429 = vperm.xlu0 %1874, %v1323_v48   ;;  %v1324_v48 = vld [vmem:[%s3337_s3 + $0x58] sm:$0xff] }
 0x197   :  { %1414 = vperm.xlu1 %1875, %v1320_v10  }
 0x199   :  { %v2775_v32 = vpop.permute.xlu1 %966  ;;  %v2777_v5 = vpop.permute.xlu0 %592 }
 0x19a   :  { %1439 = vperm.xlu0 %1874, %v1325_v8   ;;  %v1326_v8 = vld [vmem:[%s3337_s3 + $0x68] sm:$0xff] }
 0x19b   :  { %1424 = vperm.xlu1 %1875, %v1322_v56  }
 0x19d   :  { %v2785_v10 = vpop.permute.xlu1 %974  ;;  %v2787_v1 = vpop.permute.xlu0 %602 }
 0x19e   :  { %3434 = vst [vmem:[#allocation96_spill] sm:$0xff] %v2785_v10  ;;  %3435 = vst [vmem:[#allocation97_spill] sm:$0xff] %v2787_v1  ;;  %1449 = vperm.xlu0 %1874, %v1327_v9   ;;  %v1328_v9 = vld [vmem:[%s3337_s3 + $0x78] sm:$0xff]  ;;  %v1346_v10 = vld [vmem:[%s3337_s3 + $0x108] sm:$0xff] }
 0x19f   :  { %1434 = vperm.xlu1 %1875, %v1324_v48  }
 0x1a1   :  { %v2795_v56 = vpop.permute.xlu1 %982  ;;  %v2797_v62 = vpop.permute.xlu0 %612 }
 0x1a2   :  { %3436 = vst [vmem:[#allocation98_spill] sm:$0xff] %v2795_v56  ;;  %3437 = vst [vmem:[#allocation99_spill] sm:$0xff] %v2797_v62  ;;  %1459 = vperm.xlu0 %1874, %v1329_v2   ;;  %v1333_v62 = vld [vmem:[%s3337_s3 + $0xa0] sm:$0xff]  ;;  %v1330_v2 = vld [vmem:[%s3337_s3 + $0x88] sm:$0xff] }
 0x1a3   :  { %1444 = vperm.xlu1 %1875, %v1326_v8  }
 0x1a5   :  { %v2805_v48 = vpop.permute.xlu1 %990  ;;  %v2807_v40 = vpop.permute.xlu0 %622 }
 0x1a6   :  { %3438 = vst [vmem:[#allocation100_spill] sm:$0xff] %v2805_v48  ;;  %3439 = vst [vmem:[#allocation101_spill] sm:$0xff] %v2807_v40  ;;  %1469 = vperm.xlu0 %1874, %v1331_v12   ;;  %v1335_v40 = vld [vmem:[%s3337_s3 + $0xb0] sm:$0xff]  ;;  %v1332_v12 = vld [vmem:[%s3337_s3 + $0x98] sm:$0xff] }
 0x1a7   :  { %1454 = vperm.xlu1 %1875, %v1328_v9  }
 0x1a9   :  { %v2815_v8 = vpop.permute.xlu1 %998  ;;  %v2817_v56 = vpop.permute.xlu0 %632 }
 0x1aa   :  { %3440 = vst [vmem:[#allocation102_spill] sm:$0xff] %v2815_v8  ;;  %3441 = vst [vmem:[#allocation103_spill] sm:$0xff] %v2817_v56  ;;  %1479 = vperm.xlu0 %1874, %v1333_v62   ;;  %v1337_v56 = vld [vmem:[%s3337_s3 + $0xc0] sm:$0xff]  ;;  %v1334_v62 = vld [vmem:[%s3337_s3 + $0xa8] sm:$0xff] }
 0x1ab   :  { %1464 = vperm.xlu1 %1875, %v1330_v2  }
 0x1ad   :  { %v2825_v9 = vpop.permute.xlu1 %1006  ;;  %v2827_v48 = vpop.permute.xlu0 %642 }
 0x1ae   :  { %3442 = vst [vmem:[#allocation104_spill] sm:$0xff] %v2825_v9  ;;  %3443 = vst [vmem:[#allocation105_spill] sm:$0xff] %v2827_v48  ;;  %1489 = vperm.xlu0 %1874, %v1335_v40   ;;  %v1339_v48 = vld [vmem:[%s3337_s3 + $0xd0] sm:$0xff]  ;;  %v1336_v40 = vld [vmem:[%s3337_s3 + $0xb8] sm:$0xff] }
 0x1af   :  { %1474 = vperm.xlu1 %1875, %v1332_v12  }
 0x1b1   :  { %v2835_v2 = vpop.permute.xlu1 %1014  ;;  %v2837_v8 = vpop.permute.xlu0 %652 }
 0x1b2   :  { %3444 = vst [vmem:[#allocation106_spill] sm:$0xff] %v2835_v2  ;;  %3445 = vst [vmem:[#allocation107_spill] sm:$0xff] %v2837_v8  ;;  %1499 = vperm.xlu0 %1874, %v1337_v56   ;;  %v1341_v8 = vld [vmem:[%s3337_s3 + $0xe0] sm:$0xff]  ;;  %v1338_v56 = vld [vmem:[%s3337_s3 + $0xc8] sm:$0xff] }
 0x1b3   :  { %1484 = vperm.xlu1 %1875, %v1334_v62  }
 0x1b5   :  { %v2845_v12 = vpop.permute.xlu1 %1022  ;;  %v2847_v9 = vpop.permute.xlu0 %662 }
 0x1b6   :  { %3446 = vst [vmem:[#allocation108_spill] sm:$0xff] %v2845_v12  ;;  %3447 = vst [vmem:[#allocation109_spill] sm:$0xff] %v2847_v9  ;;  %1509 = vperm.xlu0 %1874, %v1339_v48   ;;  %v1343_v9 = vld [vmem:[%s3337_s3 + $0xf0] sm:$0xff]  ;;  %v1340_v48 = vld [vmem:[%s3337_s3 + $0xd8] sm:$0xff] }
 0x1b7   :  { %1494 = vperm.xlu1 %1875, %v1336_v40  }
 0x1b9   :  { %v2855_v62 = vpop.permute.xlu1 %1030  ;;  %v2857_v2 = vpop.permute.xlu0 %672 }
 0x1ba   :  { %3448 = vst [vmem:[#allocation110_spill] sm:$0xff] %v2855_v62  ;;  %3449 = vst [vmem:[#allocation111_spill] sm:$0xff] %v2857_v2  ;;  %1519 = vperm.xlu0 %1874, %v1341_v8   ;;  %v1345_v2 = vld [vmem:[%s3337_s3 + $0x100] sm:$0xff]  ;;  %v1342_v8 = vld [vmem:[%s3337_s3 + $0xe8] sm:$0xff] }
 0x1bb   :  { %1504 = vperm.xlu1 %1875, %v1338_v56  }
 0x1bd   :  { %v2865_v40 = vpop.permute.xlu1 %1038  ;;  %v2867_v12 = vpop.permute.xlu0 %682 }
 0x1be   :  { %3450 = vst [vmem:[#allocation112_spill] sm:$0xff] %v2865_v40  ;;  %3451 = vst [vmem:[#allocation113_spill] sm:$0xff] %v2867_v12  ;;  %1529 = vperm.xlu0 %1874, %v1343_v9   ;;  %v2882_v40 = vld [vmem:[%s3334_s0] ss:$0 sm:$0xff]  ;;  %v1347_v9 = vld [vmem:[%s3337_s3 + $0x110] sm:$0xff] }
 0x1bf   :  { %1514 = vperm.xlu1 %1875, %v1340_v48   ;;  %v508_v48 = vmul.f32 %v2882_v40, %v2595_v7  ;;  %v1349_v7 = vld [vmem:[%s3337_s3 + $0x120] sm:$0xff]  ;;  %v510_v1 = vmul.f32 %v2882_v40, %v2603_v11  ;;  %v512_v11 = vmul.f32 %v2882_v40, %v2611_v15  ;;  %v514_v15 = vmul.f32 %v2882_v40, %v2619_v19 }
 0x1c0   :  { %v516_v19 = vmul.f32 %v2882_v40, %v2627_v23  ;;  %v518_v23 = vmul.f32 %v2882_v40, %v2635_v27  ;;  %v520_v27 = vmul.f32 %v2882_v40, %v2643_v31  ;;  %v522_v31 = vmul.f32 %v2882_v40, %v2651_v35 }
 0x1c1   :  { %v2875_v56 = vpop.permute.xlu1 %1046  ;;  %v2877_v62 = vpop.permute.xlu0 %692  ;;  %v524_v35 = vmul.f32 %v2882_v40, %v2659_v47  ;;  %v526_v47 = vmul.f32 %v2882_v40, %v2667_v63  ;;  %v528_v63 = vmul.f32 %v2882_v40, %v2675_v18  ;;  %v530_v18 = vmul.f32 %v2882_v40, %v2683_v34 }
 0x1c2   :  { %3452 = vst [vmem:[#allocation114_spill] sm:$0xff] %v2875_v56  ;;  %3453 = vst [vmem:[#allocation115_spill] sm:$0xff] %v2877_v62  ;;  %1539 = vperm.xlu0 %1874, %v1345_v2   ;;  %v1344_v56 = vld [vmem:[%s3337_s3 + $0xf8] sm:$0xff]  ;;  %v2895_v2 = vld [vmem:[%s3334_s0 + $0x1] ss:$0 sm:$0xff]  ;;  %v532_v34 = vmul.f32 %v2882_v40, %v2691_v4  ;;  %v534_v4 = vmul.f32 %v2882_v40, %v2699_v59  ;;  %v536_v59 = vmul.f32 %v2882_v40, %v2707_v26 }
 0x1c3   :  { %1524 = vperm.xlu1 %1875, %v1342_v8   ;;  %v1374_v26 = vld [vmem:[%s3337_s3 + $0x1e8] sm:$0xff] }
 0x1c5   :  { %v1055_v62 = vpop.permute.xlu1 %1054  ;;  %v703_v12 = vpop.permute.xlu0 %702 }
 0x1c6   :  { %v1217_v8 = vmul.f32 %v2895_v2, %v1055_v62  ;;  %v892_v61 = vadd.f32 %v703_v12, %v508_v48  ;;  %1549 = vperm.xlu0 %1874, %v1347_v9   ;;  %v1348_v9 = vld [vmem:[%s3337_s3 + $0x118] sm:$0xff] }
 0x1c7   :  { %1534 = vperm.xlu1 %1875, %v1344_v56   ;;  %v1351_v56 = vld [vmem:[%s3337_s3 + $0x130] sm:$0xff] }
 0x1c8   :  { %v2906_v58 = vadd.f32 %v1217_v8, %v892_v61 }
 0x1c9   :  { %v1063_v13 = vpop.permute.xlu1 %1062  ;;  %v713_v24 = vpop.permute.xlu0 %712 }
 0x1ca   :  { %v1219_v62 = vmul.f32 %v2895_v2, %v1063_v13  ;;  %v894_v12 = vadd.f32 %v713_v24, %v510_v1  ;;  %1559 = vperm.xlu0 %1874, %v1349_v7   ;;  %v1353_v1 = vld [vmem:[%s3337_s3 + $0x140] sm:$0xff] }
 0x1cb   :  { %1544 = vperm.xlu1 %1875, %v1346_v10   ;;  %v1350_v10 = vld [vmem:[%s3337_s3 + $0x128] sm:$0xff] }
 0x1cc   :  { %v2917_v61 = vadd.f32 %v1219_v62, %v894_v12 }
 0x1cd   :  { %v1071_v48 = vpop.permute.xlu1 %1070  ;;  %v723_v8 = vpop.permute.xlu0 %722 }
 0x1ce   :  { %v1221_v13 = vmul.f32 %v2895_v2, %v1071_v48  ;;  %v896_v24 = vadd.f32 %v723_v8, %v512_v11  ;;  %1569 = vperm.xlu0 %1874, %v1351_v56   ;;  %v1355_v56 = vld [vmem:[%s3337_s3 + $0x150] sm:$0xff] }
 0x1cf   :  { %1554 = vperm.xlu1 %1875, %v1348_v9   ;;  %v1352_v9 = vld [vmem:[%s3337_s3 + $0x138] sm:$0xff] }
 0x1d0   :  { %v2928_v7 = vadd.f32 %v1221_v13, %v896_v24 }
 0x1d1   :  { %v1079_v62 = vpop.permute.xlu1 %1078  ;;  %v733_v12 = vpop.permute.xlu0 %732 }
 0x1d2   :  { %v1223_v48 = vmul.f32 %v2895_v2, %v1079_v62  ;;  %v898_v11 = vadd.f32 %v733_v12, %v514_v15  ;;  %1579 = vperm.xlu0 %1874, %v1353_v1   ;;  %v1357_v1 = vld [vmem:[%s3337_s3 + $0x160] sm:$0xff] }
 0x1d3   :  { %1564 = vperm.xlu1 %1875, %v1350_v10   ;;  %v1354_v10 = vld [vmem:[%s3337_s3 + $0x148] sm:$0xff] }
 0x1d4   :  { %v2939_v8 = vadd.f32 %v1223_v48, %v898_v11 }
 0x1d5   :  { %v1087_v13 = vpop.permute.xlu1 %1086  ;;  %v743_v24 = vpop.permute.xlu0 %742 }
 0x1d6   :  { %v1225_v62 = vmul.f32 %v2895_v2, %v1087_v13  ;;  %v900_v15 = vadd.f32 %v743_v24, %v516_v19  ;;  %1589 = vperm.xlu0 %1874, %v1355_v56   ;;  %v1359_v56 = vld [vmem:[%s3337_s3 + $0x170] sm:$0xff] }
 0x1d7   :  { %1574 = vperm.xlu1 %1875, %v1352_v9   ;;  %v1356_v9 = vld [vmem:[%s3337_s3 + $0x158] sm:$0xff] }
 0x1d8   :  { %v2950_v12 = vadd.f32 %v1225_v62, %v900_v15 }
 0x1d9   :  { %v1095_v48 = vpop.permute.xlu1 %1094  ;;  %v753_v11 = vpop.permute.xlu0 %752 }
 0x1da   :  { %v1227_v13 = vmul.f32 %v2895_v2, %v1095_v48  ;;  %v902_v19 = vadd.f32 %v753_v11, %v518_v23  ;;  %1599 = vperm.xlu0 %1874, %v1357_v1   ;;  %v1361_v1 = vld [vmem:[%s3337_s3 + $0x180] sm:$0xff] }
 0x1db   :  { %1584 = vperm.xlu1 %1875, %v1354_v10   ;;  %v1358_v10 = vld [vmem:[%s3337_s3 + $0x168] sm:$0xff] }
 0x1dc   :  { %v2961_v24 = vadd.f32 %v1227_v13, %v902_v19 }
 0x1dd   :  { %v1103_v62 = vpop.permute.xlu1 %1102  ;;  %v763_v15 = vpop.permute.xlu0 %762 }
 0x1de   :  { %v1229_v48 = vmul.f32 %v2895_v2, %v1103_v62  ;;  %v904_v23 = vadd.f32 %v763_v15, %v520_v27  ;;  %1609 = vperm.xlu0 %1874, %v1359_v56   ;;  %v1363_v56 = vld [vmem:[%s3337_s3 + $0x190] sm:$0xff] }
 0x1df   :  { %1594 = vperm.xlu1 %1875, %v1356_v9   ;;  %v1360_v9 = vld [vmem:[%s3337_s3 + $0x178] sm:$0xff] }
 0x1e0   :  { %v2972_v11 = vadd.f32 %v1229_v48, %v904_v23 }
 0x1e1   :  { %v1111_v13 = vpop.permute.xlu1 %1110  ;;  %v773_v19 = vpop.permute.xlu0 %772 }
 0x1e2   :  { %v1231_v62 = vmul.f32 %v2895_v2, %v1111_v13  ;;  %v906_v27 = vadd.f32 %v773_v19, %v522_v31  ;;  %1619 = vperm.xlu0 %1874, %v1361_v1   ;;  %v1365_v1 = vld [vmem:[%s3337_s3 + $0x1a0] sm:$0xff] }
 0x1e3   :  { %1604 = vperm.xlu1 %1875, %v1358_v10   ;;  %v1362_v10 = vld [vmem:[%s3337_s3 + $0x188] sm:$0xff] }
 0x1e4   :  { %v2983_v15 = vadd.f32 %v1231_v62, %v906_v27 }
 0x1e5   :  { %v1119_v48 = vpop.permute.xlu1 %1118  ;;  %v783_v23 = vpop.permute.xlu0 %782 }
 0x1e6   :  { %v1233_v13 = vmul.f32 %v2895_v2, %v1119_v48  ;;  %v908_v31 = vadd.f32 %v783_v23, %v524_v35  ;;  %1629 = vperm.xlu0 %1874, %v1363_v56   ;;  %v1367_v56 = vld [vmem:[%s3337_s3 + $0x1b0] sm:$0xff] }
 0x1e7   :  { %1614 = vperm.xlu1 %1875, %v1360_v9   ;;  %v1364_v9 = vld [vmem:[%s3337_s3 + $0x198] sm:$0xff] }
 0x1e8   :  { %v2994_v19 = vadd.f32 %v1233_v13, %v908_v31 }
 0x1e9   :  { %v1127_v62 = vpop.permute.xlu1 %1126  ;;  %v793_v27 = vpop.permute.xlu0 %792 }
 0x1ea   :  { %v1235_v48 = vmul.f32 %v2895_v2, %v1127_v62  ;;  %v910_v35 = vadd.f32 %v793_v27, %v526_v47  ;;  %1639 = vperm.xlu0 %1874, %v1365_v1   ;;  %v1369_v1 = vld [vmem:[%s3337_s3 + $0x1c0] sm:$0xff] }
 0x1eb   :  { %1624 = vperm.xlu1 %1875, %v1362_v10   ;;  %v1366_v10 = vld [vmem:[%s3337_s3 + $0x1a8] sm:$0xff] }
 0x1ec   :  { %v3005_v23 = vadd.f32 %v1235_v48, %v910_v35 }
 0x1ed   :  { %v1135_v13 = vpop.permute.xlu1 %1134  ;;  %v803_v31 = vpop.permute.xlu0 %802 }
 0x1ee   :  { %v1237_v62 = vmul.f32 %v2895_v2, %v1135_v13  ;;  %v912_v47 = vadd.f32 %v803_v31, %v528_v63  ;;  %1649 = vperm.xlu0 %1874, %v1367_v56   ;;  %v1371_v56 = vld [vmem:[%s3337_s3 + $0x1d0] sm:$0xff] }
 0x1ef   :  { %1634 = vperm.xlu1 %1875, %v1364_v9   ;;  %v1368_v9 = vld [vmem:[%s3337_s3 + $0x1b8] sm:$0xff] }
 0x1f0   :  { %v3016_v27 = vadd.f32 %v1237_v62, %v912_v47 }
 0x1f1   :  { %v1143_v48 = vpop.permute.xlu1 %1142  ;;  %v813_v35 = vpop.permute.xlu0 %812 }
 0x1f2   :  { %v1239_v13 = vmul.f32 %v2895_v2, %v1143_v48  ;;  %v914_v63 = vadd.f32 %v813_v35, %v530_v18  ;;  %1659 = vperm.xlu0 %1874, %v1369_v1   ;;  %v1373_v1 = vld [vmem:[%s3337_s3 + $0x1e0] sm:$0xff] }
 0x1f3   :  { %1644 = vperm.xlu1 %1875, %v1366_v10   ;;  %v1370_v10 = vld [vmem:[%s3337_s3 + $0x1c8] sm:$0xff] }
 0x1f4   :  { %v3027_v31 = vadd.f32 %v1239_v13, %v914_v63 }
 0x1f5   :  { %v1151_v62 = vpop.permute.xlu1 %1150  ;;  %v823_v47 = vpop.permute.xlu0 %822 }
 0x1f6   :  { %v1241_v48 = vmul.f32 %v2895_v2, %v1151_v62  ;;  %v916_v18 = vadd.f32 %v823_v47, %v532_v34  ;;  %1669 = vperm.xlu0 %1874, %v1371_v56   ;;  %v1375_v56 = vld [vmem:[%s3337_s3 + $0x1f0] sm:$0xff] }
 0x1f7   :  { %1654 = vperm.xlu1 %1875, %v1368_v9   ;;  %v1372_v9 = vld [vmem:[%s3337_s3 + $0x1d8] sm:$0xff] }
 0x1f8   :  { %v3038_v35 = vadd.f32 %v1241_v48, %v916_v18 }
 0x1f9   :  { %v1159_v13 = vpop.permute.xlu1 %1158  ;;  %v833_v63 = vpop.permute.xlu0 %832 }
 0x1fa   :  { %v1243_v62 = vmul.f32 %v2895_v2, %v1159_v13  ;;  %v918_v34 = vadd.f32 %v833_v63, %v534_v4  ;;  %1679 = vperm.xlu0 %1874, %v1373_v1   ;;  %v1830_v1 = vld [vmem:[#allocation2] sm:$0x1] }
 0x1fb   :  { %1664 = vperm.xlu1 %1875, %v1370_v10   ;;  %v538_v10 = vmul.f32 %v2882_v40, %v2715_v22  ;;  %v478_v22 = vmul.f32 %v2882_v40, %v2052_v37  ;;  %v1187_v37 = vmul.f32 %v2895_v2, %v2735_v6 }
 0x1fc   :  { %v3049_v47 = vadd.f32 %v1243_v62, %v918_v34  ;;  %v476_v62 = vmul.f32 %v2882_v40, %v2466_v3  ;;  %v477_v34 = vmul.f32 %v2882_v40, %v2475_v43  ;;  %v1376_v3 = vld [vmem:[%s3337_s3 + $0x1f8] sm:$0xff] }
 0x1fd   :  { %v1167_v48 = vpop.permute.xlu1 %1166  ;;  %v843_v18 = vpop.permute.xlu0 %842 }
 0x1fe   :  { %v1245_v13 = vmul.f32 %v2895_v2, %v1167_v48  ;;  %v920_v4 = vadd.f32 %v843_v18, %v536_v59  ;;  %1689 = vperm.xlu0 %1874, %v1375_v56   ;;  %v1186_v18 = vmul.f32 %v2895_v2, %v2724_v55 }
 0x1ff   :  { %1674 = vperm.xlu1 %1875, %v1372_v9  }
 0x200   :  { %v3057_v63 = vadd.f32 %v1245_v13, %v920_v4  ;;  %v860_v13 = vadd.f32 %v2726_v51, %v476_v62  ;;  %v1185_v4 = vmul.f32 %v2895_v2, %v2054_v38  ;;  %v479_v51 = vmul.f32 %v2882_v40, %v2066_v41 }
 0x201   :  { %v1175_v48 = vpop.permute.xlu1 %1174  ;;  %v853_v59 = vpop.permute.xlu0 %852  ;;  %v1188_v41 = vmul.f32 %v2895_v2, %v2068_v42 }
 0x202   :  { %v1247_v56 = vmul.f32 %v2895_v2, %v1175_v48  ;;  %v922_v9 = vadd.f32 %v853_v59, %v538_v10  ;;  %1833 = vperm.xlu0 %1874, %v1830_v1   ;;  %v861_v1 = vadd.f32 %v2464_v29, %v477_v34  ;;  %v862_v10 = vadd.f32 %v2737_v0, %v478_v22 }
 0x203   :  { %1684 = vperm.xlu1 %1875, %v1374_v26   ;;  %v1249_v62 = vadd.f32 %v1185_v4, %v860_v13  ;;  %v480_v59 = vmul.f32 %v2882_v40, %v2483_v25  ;;  %v863_v38 = vadd.f32 %v2473_v30, %v479_v51  ;;  %v1189_v0 = vmul.f32 %v2895_v2, %v2745_v33 }
 0x204   :  { %v3072_v43 = vadd.f32 %v1247_v56, %v922_v9  ;;  %v1250_v26 = vadd.f32 %v1186_v18, %v861_v1  ;;  %v1251_v9 = vadd.f32 %v1187_v37, %v862_v10  ;;  %v481_v18 = vmul.f32 %v2882_v40, %v2079_v45 }
 0x205   :  { %v1385_v55 = vpop.permute.xlu0 %1384  ;;  %v864_v6 = vadd.f32 %v2747_v60, %v480_v59  ;;  %v482_v30 = vmul.f32 %v2882_v40, %v2491_v20  ;;  %v1252_v1 = vadd.f32 %v1188_v41, %v863_v38  ;;  %v1190_v33 = vmul.f32 %v2895_v2, %v2081_v46 }
 0x206   :  { %v1380_v48 = vpop.permute.xlu1 %1379  ;;  %v1698_v56 = vmul.f32 %v1385_v55, %v1250_v26  ;;  %v865_v25 = vadd.f32 %v2481_v21, %v481_v18  ;;  %v483_v60 = vmul.f32 %v2882_v40, %v2092_v49  ;;  %v1191_v45 = vmul.f32 %v2895_v2, %v2755_v39 }
 0x207   :  { %1694 = vperm.xlu1 %1875, %v1376_v3   ;;  %v1697_v29 = vmul.f32 %v1380_v48, %v1249_v62  ;;  %v1253_v37 = vadd.f32 %v1189_v0, %v864_v6  ;;  %v866_v10 = vadd.f32 %v2757_v52, %v482_v30  ;;  %v484_v48 = vmul.f32 %v2882_v40, %v2499_v17  ;;  %v3455_v30 = vld [vmem:[#allocation61_spill] sm:$0xff] }
 0x208   :  { %v867_v20 = vadd.f32 %v2489_v14, %v483_v60  ;;  %v1254_v62 = vadd.f32 %v1190_v33, %v865_v25  ;;  %v1192_v49 = vmul.f32 %v2895_v2, %v2094_v50  ;;  %v1193_v59 = vmul.f32 %v2895_v2, %v2765_v36  ;;  %v3454_v25 = vld [vmem:[#allocation59_spill] sm:$0xff]  ;;  %v3456_v60 = vld [vmem:[#allocation6_spill] sm:$0xff] }
 0x209   :  { %v1400_v34 = vpop.permute.xlu0 %1399  ;;  %v1761_v3 = vadd.f32 %v1698_v56, %v1697_v29  ;;  %v868_v39 = vadd.f32 %v2767_v44, %v484_v48  ;;  %v485_v38 = vmul.f32 %v2882_v40, %v2105_v53  ;;  %v1255_v14 = vadd.f32 %v1191_v45, %v866_v10  ;;  %v3459_v10 = vld [vmem:[#allocation7_spill] sm:$0xff] }
 0x20a   :  { %v1390_v22 = vpop.permute.xlu1 %1389  ;;  %v1701_v51 = vmul.f32 %v1400_v34, %v1253_v37  ;;  %v1256_v17 = vadd.f32 %v1192_v49, %v867_v20  ;;  %v1194_v36 = vmul.f32 %v2895_v2, %v2107_v54  ;;  %v487_v44 = vmul.f32 %v2882_v40, %v2118_v57  ;;  %v3457_v37 = vld [vmem:[#allocation96_spill] sm:$0xff] }
 0x20b   :  { %v1699_v13 = vmul.f32 %v1390_v22, %v1251_v9  ;;  %v869_v34 = vadd.f32 %v2497_v28, %v485_v38  ;;  %v486_v9 = vmul.f32 %v2882_v40, %v2507_v16  ;;  %v1257_v22 = vadd.f32 %v1193_v59, %v868_v39  ;;  %v3462_v38 = vld [vmem:[#allocation8_spill] sm:$0xff] }
 0x20c   :  { %v1195_v41 = vmul.f32 %v2895_v2, %v2775_v32  ;;  %v871_v16 = vadd.f32 %v3454_v25, %v487_v44  ;;  %v1196_v57 = vmul.f32 %v2895_v2, %v3456_v60  ;;  %v3458_v32 = vld [vmem:[#allocation97_spill] sm:$0xff] }
 0x20d   :  { %v1410_v4 = vpop.permute.xlu0 %1409  ;;  %v1762_v21 = vadd.f32 %v1761_v3, %v1699_v13  ;;  %v870_v18 = vadd.f32 %v2777_v5, %v486_v9  ;;  %v488_v3 = vmul.f32 %v2882_v40, %v3455_v30  ;;  %v1258_v33 = vadd.f32 %v1194_v36, %v869_v34  ;;  %v3464_v9 = vld [vmem:[#allocation98_spill] sm:$0xff] }
 0x20e   :  { %v1395_v42 = vpop.permute.xlu1 %1394  ;;  %v1703_v0 = vmul.f32 %v1410_v4, %v1255_v14  ;;  %v1198_v14 = vmul.f32 %v2895_v2, %v3462_v38  ;;  %v3468_v30 = vld [vmem:[#allocation10_spill] sm:$0xff] }
 0x20f   :  { %v1700_v55 = vmul.f32 %v1395_v42, %v1252_v1  ;;  %v1197_v42 = vmul.f32 %v2895_v2, %v3457_v37  ;;  %v872_v45 = vadd.f32 %v3458_v32, %v488_v3  ;;  %v1200_v3 = vmul.f32 %v2895_v2, %v3468_v30  ;;  %v3471_v37 = vld [vmem:[#allocation11_spill] sm:$0xff] }
 0x211   :  { %v1763_v26 = vadd.f32 %v1762_v21, %v1700_v55  ;;  %v1420_v46 = vpop.permute.xlu0 %1419  ;;  %v489_v21 = vmul.f32 %v2882_v40, %v3459_v10  ;;  %v1259_v55 = vadd.f32 %v1195_v41, %v870_v18 }
 0x212   :  { %v1405_v52 = vpop.permute.xlu1 %1404  ;;  %v1705_v4 = vmul.f32 %v1420_v46, %v1257_v22 }
 0x213   :  { %v1764_v56 = vadd.f32 %v1763_v26, %v1701_v51  ;;  %v1702_v29 = vmul.f32 %v1405_v52, %v1254_v62  ;;  %v1260_v51 = vadd.f32 %v1196_v57, %v871_v16  ;;  %v3460_v26 = vld [vmem:[#allocation60_spill] sm:$0xff]  ;;  %v3461_v62 = vld [vmem:[#allocation63_spill] sm:$0xff] }
 0x214   :  { %v873_v46 = vadd.f32 %v3460_v26, %v489_v21  ;;  %v490_v49 = vmul.f32 %v2882_v40, %v3461_v62 }
 0x215   :  { %v1765_v50 = vadd.f32 %v1764_v56, %v1702_v29  ;;  %v1430_v6 = vpop.permute.xlu0 %1429  ;;  %v3463_v56 = vld [vmem:[#allocation9_spill] sm:$0xff] }
 0x216   :  { %v1415_v53 = vpop.permute.xlu1 %1414  ;;  %v1707_v59 = vmul.f32 %v1430_v6, %v1259_v55  ;;  %v491_v29 = vmul.f32 %v2882_v40, %v3463_v56  ;;  %v3467_v6 = vld [vmem:[#allocation65_spill] sm:$0xff]  ;;  %v1262_v16 = vadd.f32 %v1198_v14, %v873_v46  ;;  %v3473_v55 = vld [vmem:[#allocation67_spill] sm:$0xff]  ;;  %v3474_v46 = vld [vmem:[#allocation12_spill] sm:$0xff] }
 0x217   :  { %v1704_v28 = vmul.f32 %v1415_v53, %v1256_v17  ;;  %v1766_v13 = vadd.f32 %v1765_v50, %v1703_v0  ;;  %v1261_v17 = vadd.f32 %v1197_v42, %v872_v45  ;;  %v1199_v0 = vmul.f32 %v2895_v2, %v3464_v9  ;;  %v3465_v50 = vld [vmem:[#allocation99_spill] sm:$0xff]  ;;  %v3466_v53 = vld [vmem:[#allocation62_spill] sm:$0xff] }
 0x218   :  { %v874_v36 = vadd.f32 %v3465_v50, %v490_v49  ;;  %v875_v41 = vadd.f32 %v3466_v53, %v491_v29  ;;  %v492_v18 = vmul.f32 %v2882_v40, %v3467_v6  ;;  %v493_v42 = vmul.f32 %v2882_v40, %v3471_v37  ;;  %v3475_v49 = vld [vmem:[#allocation13_spill] sm:$0xff]  ;;  %v3476_v14 = vld [vmem:[#allocation102_spill] sm:$0xff]  ;;  %v3477_v29 = vld [vmem:[#allocation103_spill] sm:$0xff] }
 0x219   :  { %v1767_v1 = vadd.f32 %v1766_v13, %v1704_v28  ;;  %v1440_v54 = vpop.permute.xlu0 %1439  ;;  %v1202_v62 = vmul.f32 %v2895_v2, %v3474_v46  ;;  %v1203_v56 = vmul.f32 %v2895_v2, %v3476_v14  ;;  %v3480_v6 = vld [vmem:[#allocation14_spill] sm:$0xff] }
 0x21a   :  { %v1425_v5 = vpop.permute.xlu1 %1424  ;;  %v1709_v28 = vmul.f32 %v1440_v54, %v1261_v17  ;;  %v1263_v32 = vadd.f32 %v1199_v0, %v874_v36  ;;  %v1264_v10 = vadd.f32 %v1200_v3, %v875_v41  ;;  %v3472_v54 = vld [vmem:[#allocation64_spill] sm:$0xff]  ;;  %v3478_v0 = vld [vmem:[#allocation66_spill] sm:$0xff] }
 0x21b   :  { %v1706_v20 = vmul.f32 %v1425_v5, %v1258_v33  ;;  %v1768_v48 = vadd.f32 %v1767_v1, %v1705_v4  ;;  %v3469_v4 = vld [vmem:[#allocation100_spill] sm:$0xff]  ;;  %v3470_v33 = vld [vmem:[#allocation101_spill] sm:$0xff]  ;;  %v877_v21 = vadd.f32 %v3472_v54, %v493_v42 }
 0x21c   :  { %v1201_v1 = vmul.f32 %v2895_v2, %v3469_v4  ;;  %v876_v60 = vadd.f32 %v3470_v33, %v492_v18  ;;  %v1204_v18 = vmul.f32 %v2895_v2, %v3480_v6  ;;  %v3483_v4 = vld [vmem:[#allocation15_spill] sm:$0xff] }
 0x21d   :  { %v1769_v39 = vadd.f32 %v1768_v48, %v1706_v20  ;;  %v1450_v52 = vpop.permute.xlu0 %1449  ;;  %v494_v20 = vmul.f32 %v2882_v40, %v3473_v55  ;;  %v1266_v41 = vadd.f32 %v1202_v62, %v877_v21  ;;  %v3486_v21 = vld [vmem:[#allocation16_spill] sm:$0xff]  ;;  %v3488_v62 = vld [vmem:[#allocation106_spill] sm:$0xff] }
 0x21e   :  { %v1435_v34 = vpop.permute.xlu1 %1434  ;;  %v1711_v48 = vmul.f32 %v1450_v52, %v1263_v32  ;;  %v3479_v52 = vld [vmem:[#allocation69_spill] sm:$0xff]  ;;  %v3485_v32 = vld [vmem:[#allocation71_spill] sm:$0xff]  ;;  %v1206_v55 = vmul.f32 %v2895_v2, %v3486_v21 }
 0x21f   :  { %v1708_v44 = vmul.f32 %v1435_v34, %v1260_v51  ;;  %v1770_v22 = vadd.f32 %v1769_v39, %v1707_v59  ;;  %v495_v59 = vmul.f32 %v2882_v40, %v3475_v49  ;;  %v1265_v39 = vadd.f32 %v1201_v1, %v876_v60 }
 0x220   :  { %v878_v17 = vadd.f32 %v3477_v29, %v494_v20  ;;  %v496_v36 = vmul.f32 %v2882_v40, %v3479_v52  ;;  %v497_v1 = vmul.f32 %v2882_v40, %v3483_v4  ;;  %v3487_v20 = vld [vmem:[#allocation17_spill] sm:$0xff]  ;;  %v1207_v49 = vmul.f32 %v2895_v2, %v3488_v62  ;;  %v3492_v52 = vld [vmem:[#allocation18_spill] sm:$0xff] }
 0x221   :  { %v1771_v13 = vadd.f32 %v1770_v22, %v1708_v44  ;;  %v1460_v25 = vpop.permute.xlu0 %1459  ;;  %v879_v50 = vadd.f32 %v3478_v0, %v495_v59  ;;  %v3489_v59 = vld [vmem:[#allocation107_spill] sm:$0xff] }
 0x222   :  { %v1445_v57 = vpop.permute.xlu1 %1444  ;;  %v1713_v44 = vmul.f32 %v1460_v25, %v1265_v39  ;;  %v1267_v33 = vadd.f32 %v1203_v56, %v878_v17  ;;  %v3484_v25 = vld [vmem:[#allocation68_spill] sm:$0xff]  ;;  %v3490_v56 = vld [vmem:[#allocation70_spill] sm:$0xff] }
 0x223   :  { %v1710_v45 = vmul.f32 %v1445_v57, %v1262_v16  ;;  %v1772_v5 = vadd.f32 %v1771_v13, %v1709_v28  ;;  %v3481_v28 = vld [vmem:[#allocation104_spill] sm:$0xff]  ;;  %v3482_v16 = vld [vmem:[#allocation105_spill] sm:$0xff]  ;;  %v1268_v37 = vadd.f32 %v1204_v18, %v879_v50  ;;  %v881_v42 = vadd.f32 %v3484_v25, %v497_v1 }
 0x224   :  { %v1205_v13 = vmul.f32 %v2895_v2, %v3481_v28  ;;  %v880_v30 = vadd.f32 %v3482_v16, %v496_v36  ;;  %v1208_v36 = vmul.f32 %v2895_v2, %v3492_v52  ;;  %v3495_v28 = vld [vmem:[#allocation19_spill] sm:$0xff] }
 0x225   :  { %v1773_v51 = vadd.f32 %v1772_v5, %v1710_v45  ;;  %v1470_v26 = vpop.permute.xlu0 %1469  ;;  %v498_v45 = vmul.f32 %v2882_v40, %v3485_v32  ;;  %v1270_v50 = vadd.f32 %v1206_v55, %v881_v42  ;;  %v3498_v42 = vld [vmem:[#allocation20_spill] sm:$0xff]  ;;  %v3500_v55 = vld [vmem:[#allocation110_spill] sm:$0xff] }
 0x226   :  { %v1455_v38 = vpop.permute.xlu1 %1454  ;;  %v1715_v5 = vmul.f32 %v1470_v26, %v1267_v33  ;;  %v3491_v26 = vld [vmem:[#allocation73_spill] sm:$0xff]  ;;  %v3497_v33 = vld [vmem:[#allocation75_spill] sm:$0xff]  ;;  %v1210_v32 = vmul.f32 %v2895_v2, %v3498_v42 }
 0x227   :  { %v1712_v34 = vmul.f32 %v1455_v38, %v1264_v10  ;;  %v1774_v9 = vadd.f32 %v1773_v51, %v1711_v48  ;;  %v499_v48 = vmul.f32 %v2882_v40, %v3487_v20  ;;  %v1269_v51 = vadd.f32 %v1205_v13, %v880_v30 }
 0x228   :  { %v882_v39 = vadd.f32 %v3489_v59, %v498_v45  ;;  %v500_v17 = vmul.f32 %v2882_v40, %v3491_v26  ;;  %v501_v13 = vmul.f32 %v2882_v40, %v3495_v28  ;;  %v3499_v45 = vld [vmem:[#allocation21_spill] sm:$0xff]  ;;  %v1211_v20 = vmul.f32 %v2895_v2, %v3500_v55  ;;  %v3504_v26 = vld [vmem:[#allocation22_spill] sm:$0xff] }
 0x229   :  { %v1775_v22 = vadd.f32 %v1774_v9, %v1712_v34  ;;  %v1480_v53 = vpop.permute.xlu0 %1479  ;;  %v883_v29 = vadd.f32 %v3490_v56, %v499_v48  ;;  %v3501_v48 = vld [vmem:[#allocation111_spill] sm:$0xff] }
 0x22a   :  { %v1465_v3 = vpop.permute.xlu1 %1464  ;;  %v1717_v34 = vmul.f32 %v1480_v53, %v1269_v51  ;;  %v1271_v16 = vadd.f32 %v1207_v49, %v882_v39  ;;  %v3496_v53 = vld [vmem:[#allocation72_spill] sm:$0xff]  ;;  %v3502_v49 = vld [vmem:[#allocation74_spill] sm:$0xff] }
 0x22b   :  { %v1714_v60 = vmul.f32 %v1465_v3, %v1266_v41  ;;  %v1776_v57 = vadd.f32 %v1775_v22, %v1713_v44  ;;  %v3493_v44 = vld [vmem:[#allocation108_spill] sm:$0xff]  ;;  %v3494_v41 = vld [vmem:[#allocation109_spill] sm:$0xff]  ;;  %v1272_v4 = vadd.f32 %v1208_v36, %v883_v29  ;;  %v885_v1 = vadd.f32 %v3496_v53, %v501_v13 }
 0x22c   :  { %v1209_v22 = vmul.f32 %v2895_v2, %v3493_v44  ;;  %v884_v6 = vadd.f32 %v3494_v41, %v500_v17  ;;  %v1212_v17 = vmul.f32 %v2895_v2, %v3504_v26  ;;  %v3507_v44 = vld [vmem:[#allocation23_spill] sm:$0xff] }
 0x22d   :  { %v1777_v10 = vadd.f32 %v1776_v57, %v1714_v60  ;;  %v1490_v54 = vpop.permute.xlu0 %1489  ;;  %v502_v60 = vmul.f32 %v2882_v40, %v3497_v33  ;;  %v1274_v29 = vadd.f32 %v1210_v32, %v885_v1  ;;  %v3510_v1 = vld [vmem:[#allocation24_spill] sm:$0xff]  ;;  %v3512_v32 = vld [vmem:[#allocation114_spill] sm:$0xff] }
 0x22e   :  { %v1475_v46 = vpop.permute.xlu1 %1474  ;;  %v1719_v57 = vmul.f32 %v1490_v54, %v1271_v16  ;;  %v3503_v54 = vld [vmem:[#allocation77_spill] sm:$0xff]  ;;  %v3509_v16 = vld [vmem:[#allocation79_spill] sm:$0xff]  ;;  %v1214_v33 = vmul.f32 %v2895_v2, %v3510_v1  ;;  %v3521_v1 = vld [vmem:[#allocation30_spill] sm:$0xff] }
 0x22f   :  { %v1716_v38 = vmul.f32 %v1475_v46, %v1268_v37  ;;  %v1778_v14 = vadd.f32 %v1777_v10, %v1715_v5  ;;  %v503_v5 = vmul.f32 %v2882_v40, %v3499_v45  ;;  %v1273_v10 = vadd.f32 %v1209_v22, %v884_v6 }
 0x230   :  { %v886_v51 = vadd.f32 %v3501_v48, %v502_v60  ;;  %v504_v39 = vmul.f32 %v2882_v40, %v3503_v54  ;;  %v505_v22 = vmul.f32 %v2882_v40, %v3507_v44  ;;  %v3511_v60 = vld [vmem:[#allocation25_spill] sm:$0xff]  ;;  %v1215_v45 = vmul.f32 %v2895_v2, %v3512_v32  ;;  %v3518_v44 = vld [vmem:[#allocation28_spill] sm:$0xff]  ;;  %v3523_v32 = vld [vmem:[#allocation82_spill] sm:$0xff] }
 0x231   :  { %v1779_v9 = vadd.f32 %v1778_v14, %v1716_v38  ;;  %v1500_v0 = vpop.permute.xlu0 %1499  ;;  %v887_v59 = vadd.f32 %v3502_v49, %v503_v5  ;;  %v3513_v5 = vld [vmem:[#allocation115_spill] sm:$0xff]  ;;  %v3515_v49 = vld [vmem:[#allocation26_spill] sm:$0xff] }
 0x232   :  { %v1485_v18 = vpop.permute.xlu1 %1484  ;;  %v1721_v38 = vmul.f32 %v1500_v0, %v1273_v10  ;;  %v1275_v41 = vadd.f32 %v1211_v20, %v886_v51  ;;  %v3508_v0 = vld [vmem:[#allocation76_spill] sm:$0xff]  ;;  %v3514_v20 = vld [vmem:[#allocation78_spill] sm:$0xff] }
 0x233   :  { %v1718_v30 = vmul.f32 %v1485_v18, %v1270_v50  ;;  %v1780_v3 = vadd.f32 %v1779_v9, %v1717_v34  ;;  %v3505_v34 = vld [vmem:[#allocation112_spill] sm:$0xff]  ;;  %v3506_v50 = vld [vmem:[#allocation113_spill] sm:$0xff]  ;;  %v1276_v28 = vadd.f32 %v1212_v17, %v887_v59  ;;  %v889_v13 = vadd.f32 %v3508_v0, %v505_v22 }
 0x234   :  { %v1213_v9 = vmul.f32 %v2895_v2, %v3505_v34  ;;  %v888_v52 = vadd.f32 %v3506_v50, %v504_v39  ;;  %v1216_v59 = vmul.f32 %v2895_v2, %v3515_v49  ;;  %v3516_v39 = vld [vmem:[#allocation27_spill] sm:$0xff]  ;;  %v3517_v17 = vld [vmem:[#allocation80_spill] sm:$0xff]  ;;  %v1218_v22 = vmul.f32 %v2895_v2, %v3518_v44  ;;  %v3520_v0 = vld [vmem:[#allocation81_spill] sm:$0xff] }
 0x235   :  { %v1781_v37 = vadd.f32 %v1780_v3, %v1718_v30  ;;  %v1510_v25 = vpop.permute.xlu0 %1509  ;;  %v506_v30 = vmul.f32 %v2882_v40, %v3509_v16  ;;  %v3526_v49 = vld [vmem:[#allocation83_spill] sm:$0xff] }
 0x236   :  { %v1495_v21 = vpop.permute.xlu1 %1494  ;;  %v1723_v3 = vmul.f32 %v1510_v25, %v1275_v41  ;;  %v3519_v41 = vld [vmem:[#allocation29_spill] sm:$0xff] }
 0x237   :  { %v1720_v46 = vmul.f32 %v1495_v21, %v1272_v4  ;;  %v1782_v62 = vadd.f32 %v1781_v37, %v1719_v57  ;;  %v507_v57 = vmul.f32 %v2882_v40, %v3511_v60  ;;  %v1277_v37 = vadd.f32 %v1213_v9, %v888_v52  ;;  %v3522_v60 = vld [vmem:[#allocation31_spill] sm:$0xff] }
 0x238   :  { %v890_v10 = vadd.f32 %v3513_v5, %v506_v30 }
 0x239   :  { %v1783_v14 = vadd.f32 %v1782_v62, %v1720_v46  ;;  %v1520_v56 = vpop.permute.xlu0 %1519  ;;  %v891_v48 = vadd.f32 %v3514_v20, %v507_v57  ;;  %v1278_v62 = vadd.f32 %v1214_v33, %v889_v13  ;;  %v1220_v33 = vmul.f32 %v2895_v2, %v3521_v1  ;;  %v3524_v20 = vld [vmem:[#allocation32_spill] sm:$0xff] }
 0x23a   :  { %v1505_v36 = vpop.permute.xlu1 %1504  ;;  %v1725_v25 = vmul.f32 %v1520_v56, %v1277_v37  ;;  %v513_v57 = vmul.f32 %v2882_v40, %v3522_v60  ;;  %v3533_v60 = vld [vmem:[#allocation38_spill] sm:$0xff] }
 0x23b   :  { %v1722_v6 = vmul.f32 %v1505_v36, %v1274_v29  ;;  %v1784_v18 = vadd.f32 %v1783_v14, %v1721_v38  ;;  %v509_v38 = vmul.f32 %v2882_v40, %v3516_v39  ;;  %v1279_v14 = vadd.f32 %v1215_v45, %v890_v10 }
 0x23c   :  { %v1280_v36 = vadd.f32 %v1216_v59, %v891_v48  ;;  %v897_v45 = vadd.f32 %v3523_v32, %v513_v57  ;;  %v1222_v48 = vmul.f32 %v2895_v2, %v3524_v20  ;;  %v1228_v57 = vmul.f32 %v2895_v2, %v3533_v60  ;;  %v3546_v60 = vld [vmem:[#allocation47_spill] sm:$0xff] }
 0x23d   :  { %v1785_v4 = vadd.f32 %v1784_v18, %v1722_v6  ;;  %v1530_v53 = vpop.permute.xlu0 %1529  ;;  %v893_v34 = vadd.f32 %v3517_v17, %v509_v38  ;;  %v511_v6 = vmul.f32 %v2882_v40, %v3519_v41  ;;  %v3528_v17 = vld [vmem:[#allocation35_spill] sm:$0xff] }
 0x23e   :  { %v1515_v42 = vpop.permute.xlu1 %1514  ;;  %v1727_v9 = vmul.f32 %v1530_v53, %v1279_v14  ;;  %v1286_v14 = vadd.f32 %v1222_v48, %v897_v45  ;;  %v3536_v48 = vld [vmem:[#allocation40_spill] sm:$0xff] }
 0x23f   :  { %v1724_v21 = vmul.f32 %v1515_v42, %v1276_v28  ;;  %v1786_v55 = vadd.f32 %v1785_v4, %v1723_v3  ;;  %v895_v13 = vadd.f32 %v3520_v0, %v511_v6  ;;  %v1282_v4 = vadd.f32 %v1218_v22, %v893_v34  ;;  %v3530_v6 = vld [vmem:[#allocation36_spill] sm:$0xff] }
 0x240   :  { %v517_v34 = vmul.f32 %v2882_v40, %v3528_v17  ;;  %v3540_v17 = vld [vmem:[#allocation43_spill] sm:$0xff] }
 0x241   :  { %v1787_v51 = vadd.f32 %v1786_v55, %v1724_v21  ;;  %v1540_v46 = vpop.permute.xlu0 %1539  ;;  %v1284_v55 = vadd.f32 %v1220_v33, %v895_v13 }
 0x242   :  { %v1525_v54 = vpop.permute.xlu1 %1524  ;;  %v1729_v16 = vmul.f32 %v1540_v46, %v2906_v58 }
 0x243   :  { %v1726_v29 = vmul.f32 %v1525_v54, %v1278_v62  ;;  %v1788_v26 = vadd.f32 %v1787_v51, %v1725_v25  ;;  %v3525_v25 = vld [vmem:[#allocation33_spill] sm:$0xff] }
 0x244   :  { %v515_v51 = vmul.f32 %v2882_v40, %v3525_v25  ;;  %v1230_v25 = vmul.f32 %v2895_v2, %v3536_v48 }
 0x245   :  { %v1789_v50 = vadd.f32 %v1788_v26, %v1726_v29  ;;  %v1550_v52 = vpop.permute.xlu0 %1549  ;;  %v3527_v29 = vld [vmem:[#allocation34_spill] sm:$0xff] }
 0x246   :  { %v1535_v56 = vpop.permute.xlu1 %1534  ;;  %v1731_v5 = vmul.f32 %v1550_v52, %v2917_v61  ;;  %v899_v59 = vadd.f32 %v3526_v49, %v515_v51  ;;  %v1224_v26 = vmul.f32 %v2895_v2, %v3527_v29  ;;  %v3529_v52 = vld [vmem:[#allocation84_spill] sm:$0xff]  ;;  %v3537_v51 = vld [vmem:[#allocation41_spill] sm:$0xff]  ;;  %v3539_v29 = vld [vmem:[#allocation42_spill] sm:$0xff] }
 0x247   :  { %v1728_v18 = vmul.f32 %v1535_v56, %v1280_v36  ;;  %v1790_v28 = vadd.f32 %v1789_v50, %v1727_v9  ;;  %v901_v36 = vadd.f32 %v3529_v52, %v517_v34  ;;  %v525_v34 = vmul.f32 %v2882_v40, %v3540_v17  ;;  %v3541_v52 = vld [vmem:[#allocation88_spill] sm:$0xff] }
 0x248   :  { %v1288_v41 = vadd.f32 %v1224_v26, %v899_v59  ;;  %v3538_v59 = vld [vmem:[#allocation87_spill] sm:$0xff]  ;;  %v1232_v26 = vmul.f32 %v2895_v2, %v3539_v29  ;;  %v3553_v17 = vld [vmem:[#allocation92_spill] sm:$0xff] }
 0x249   :  { %v1791_v30 = vadd.f32 %v1790_v28, %v1728_v18  ;;  %v1560_v3 = vpop.permute.xlu0 %1559  ;;  %v1226_v18 = vmul.f32 %v2895_v2, %v3530_v6  ;;  %v3531_v28 = vld [vmem:[#allocation37_spill] sm:$0xff] }
 0x24a   :  { %v1545_v53 = vpop.permute.xlu1 %1544  ;;  %v1733_v54 = vmul.f32 %v1560_v3, %v2928_v7  ;;  %v519_v0 = vmul.f32 %v2882_v40, %v3531_v28 }
 0x24b   :  { %v1730_v37 = vmul.f32 %v1545_v53, %v1282_v4  ;;  %v1792_v42 = vadd.f32 %v1791_v30, %v1729_v16  ;;  %v3532_v30 = vld [vmem:[#allocation85_spill] sm:$0xff]  ;;  %v1290_v33 = vadd.f32 %v1226_v18, %v901_v36  ;;  %v909_v36 = vadd.f32 %v3541_v52, %v525_v34 }
 0x24c   :  { %v903_v3 = vadd.f32 %v3532_v30, %v519_v0  ;;  %v3543_v18 = vld [vmem:[#allocation45_spill] sm:$0xff] }
 0x24d   :  { %v1793_v10 = vadd.f32 %v1792_v42, %v1730_v37  ;;  %v1570_v21 = vpop.permute.xlu0 %1569  ;;  %v3534_v37 = vld [vmem:[#allocation39_spill] sm:$0xff]  ;;  %v527_v28 = vmul.f32 %v2882_v40, %v3543_v18 }
 0x24e   :  { %v1555_v58 = vpop.permute.xlu1 %1554  ;;  %v1735_v56 = vmul.f32 %v1570_v21, %v2939_v8  ;;  %v521_v42 = vmul.f32 %v2882_v40, %v3534_v37  ;;  %v1292_v20 = vadd.f32 %v1228_v57, %v903_v3  ;;  %v529_v57 = vmul.f32 %v2882_v40, %v3546_v60 }
 0x24f   :  { %v1732_v46 = vmul.f32 %v1555_v58, %v1284_v55  ;;  %v1794_v62 = vadd.f32 %v1793_v10, %v1731_v5  ;;  %v3535_v5 = vld [vmem:[#allocation86_spill] sm:$0xff] }
 0x250   :  { %v905_v10 = vadd.f32 %v3535_v5, %v521_v42 }
 0x251   :  { %v1795_v39 = vadd.f32 %v1794_v62, %v1732_v46  ;;  %v1580_v38 = vpop.permute.xlu0 %1579  ;;  %v523_v46 = vmul.f32 %v2882_v40, %v3537_v51 }
 0x252   :  { %v1565_v61 = vpop.permute.xlu1 %1564  ;;  %v1737_v4 = vmul.f32 %v1580_v38, %v2950_v12 }
 0x253   :  { %v1734_v9 = vmul.f32 %v1565_v61, %v1286_v14  ;;  %v1796_v50 = vadd.f32 %v1795_v39, %v1733_v54  ;;  %v907_v54 = vadd.f32 %v3538_v59, %v523_v46  ;;  %v1294_v61 = vadd.f32 %v1230_v25, %v905_v10  ;;  %v3550_v46 = vld [vmem:[#allocation91_spill] sm:$0xff] }
 0x255   :  { %v1797_v44 = vadd.f32 %v1796_v50, %v1734_v9  ;;  %v1590_v22 = vpop.permute.xlu0 %1589 }
 0x256   :  { %v1575_v7 = vpop.permute.xlu1 %1574  ;;  %v1739_v21 = vmul.f32 %v1590_v22, %v2961_v24 }
 0x257   :  { %v1736_v13 = vmul.f32 %v1575_v7, %v1288_v41  ;;  %v1798_v16 = vadd.f32 %v1797_v44, %v1735_v56  ;;  %v1296_v41 = vadd.f32 %v1232_v26, %v907_v54  ;;  %v3542_v7 = vld [vmem:[#allocation44_spill] sm:$0xff] }
 0x258   :  { %v1234_v6 = vmul.f32 %v2895_v2, %v3542_v7 }
 0x259   :  { %v1799_v53 = vadd.f32 %v1798_v16, %v1736_v13  ;;  %v1600_v1 = vpop.permute.xlu0 %1599  ;;  %v3544_v16 = vld [vmem:[#allocation89_spill] sm:$0xff] }
 0x25a   :  { %v1585_v8 = vpop.permute.xlu1 %1584  ;;  %v1741_v39 = vmul.f32 %v1600_v1, %v2972_v11  ;;  %v911_v30 = vadd.f32 %v3544_v16, %v527_v28  ;;  %v1298_v1 = vadd.f32 %v1234_v6, %v909_v36  ;;  %v3556_v6 = vld [vmem:[#allocation93_spill] sm:$0xff] }
 0x25b   :  { %v1738_v32 = vmul.f32 %v1585_v8, %v1290_v33  ;;  %v1800_v45 = vadd.f32 %v1799_v53, %v1737_v4  ;;  %v3545_v33 = vld [vmem:[#allocation46_spill] sm:$0xff] }
 0x25c   :  { %v1236_v8 = vmul.f32 %v2895_v2, %v3545_v33  ;;  %v3559_v33 = vld [vmem:[#allocation94_spill] sm:$0xff] }
 0x25d   :  { %v1801_v55 = vadd.f32 %v1800_v45, %v1738_v32  ;;  %v1610_v58 = vpop.permute.xlu0 %1609  ;;  %v3547_v32 = vld [vmem:[#allocation90_spill] sm:$0xff] }
 0x25e   :  { %v1595_v12 = vpop.permute.xlu1 %1594  ;;  %v1743_v56 = vmul.f32 %v1610_v58, %v2983_v15  ;;  %v913_v45 = vadd.f32 %v3547_v32, %v529_v57  ;;  %v3548_v58 = vld [vmem:[#allocation48_spill] sm:$0xff] }
 0x25f   :  { %v1740_v62 = vmul.f32 %v1595_v12, %v1292_v20  ;;  %v1802_v49 = vadd.f32 %v1801_v55, %v1739_v21  ;;  %v1300_v55 = vadd.f32 %v1236_v8, %v911_v30  ;;  %v1238_v20 = vmul.f32 %v2895_v2, %v3548_v58  ;;  %v3549_v12 = vld [vmem:[#allocation49_spill] sm:$0xff]  ;;  %v3557_v30 = vld [vmem:[#allocation54_spill] sm:$0xff] }
 0x260   :  { %v531_v48 = vmul.f32 %v2882_v40, %v3549_v12 }
 0x261   :  { %v1803_v38 = vadd.f32 %v1802_v49, %v1740_v62  ;;  %v1620_v14 = vpop.permute.xlu0 %1619 }
 0x262   :  { %v1605_v24 = vpop.permute.xlu1 %1604  ;;  %v1745_v3 = vmul.f32 %v1620_v14, %v2994_v19  ;;  %v915_v62 = vadd.f32 %v3550_v46, %v531_v48 }
 0x263   :  { %v1742_v9 = vmul.f32 %v1605_v24, %v1294_v61  ;;  %v1804_v50 = vadd.f32 %v1803_v38, %v1741_v39  ;;  %v1302_v39 = vadd.f32 %v1238_v20, %v913_v45  ;;  %v3551_v38 = vld [vmem:[#allocation50_spill] sm:$0xff]  ;;  %v3552_v61 = vld [vmem:[#allocation51_spill] sm:$0xff]  ;;  %v3561_v45 = vld [vmem:[#allocation57_spill] sm:$0xff] }
 0x264   :  { %v1240_v14 = vmul.f32 %v2895_v2, %v3551_v38  ;;  %v533_v24 = vmul.f32 %v2882_v40, %v3552_v61 }
 0x265   :  { %v1805_v44 = vadd.f32 %v1804_v50, %v1742_v9  ;;  %v1630_v22 = vpop.permute.xlu0 %1629 }
 0x266   :  { %v1615_v11 = vpop.permute.xlu1 %1614  ;;  %v1747_v5 = vmul.f32 %v1630_v22, %v3005_v23  ;;  %v917_v34 = vadd.f32 %v3553_v17, %v533_v24  ;;  %v1304_v52 = vadd.f32 %v1240_v14, %v915_v62  ;;  %v3555_v22 = vld [vmem:[#allocation53_spill] sm:$0xff]  ;;  %v1836_v14 = vlaneseq }
 0x267   :  { %v1744_v0 = vmul.f32 %v1615_v11, %v1296_v41  ;;  %v1806_v13 = vadd.f32 %v1805_v44, %v1743_v56  ;;  %v3554_v56 = vld [vmem:[#allocation52_spill] sm:$0xff]  ;;  %v535_v41 = vmul.f32 %v2882_v40, %v3555_v22  ;;  %v3558_v40 = vld [vmem:[#allocation55_spill] sm:$0xff] }
 0x268   :  { %v1242_v44 = vmul.f32 %v2895_v2, %v3554_v56  ;;  %v1881_v2 = vld [vmem:[%s3334_s0] ss:$0 sm:$0xff] }
 0x269   :  { %v1807_v4 = vadd.f32 %v1806_v13, %v1744_v0  ;;  %v1640_v53 = vpop.permute.xlu0 %1639  ;;  %v919_v18 = vadd.f32 %v3556_v6, %v535_v41 }
 0x26a   :  { %v1625_v15 = vpop.permute.xlu1 %1624  ;;  %v1749_v49 = vmul.f32 %v1640_v53, %v3016_v27  ;;  %v1306_v13 = vadd.f32 %v1242_v44, %v917_v34 }
 0x26b   :  { %v1746_v37 = vmul.f32 %v1625_v15, %v1298_v1  ;;  %v1808_v42 = vadd.f32 %v1807_v4, %v1745_v3  ;;  %v537_v4 = vmul.f32 %v1881_v2, %v3558_v40 }
 0x26d   :  { %v1809_v10 = vadd.f32 %v1808_v42, %v1746_v37  ;;  %v1650_v21 = vpop.permute.xlu0 %1649  ;;  %v3560_v42 = vld [vmem:[#allocation56_spill] sm:$0xff] }
 0x26e   :  { %v1635_v19 = vpop.permute.xlu1 %1634  ;;  %v1751_v9 = vmul.f32 %v1650_v21, %v3027_v31  ;;  %v1880_v31 = vld [vmem:[%s3334_s0 + $0x1] ss:$0 sm:$0xff]  ;;  %s1908_s0 = smov [#allocation3]  }
 0x26f   :  { %v1748_v25 = vmul.f32 %v1635_v19, %v1300_v55  ;;  %v1810_v51 = vadd.f32 %v1809_v10, %v1747_v5  ;;  %v1244_v3 = vmul.f32 %v1880_v31, %v3557_v30  ;;  %v1246_v32 = vmul.f32 %v1880_v31, %v3560_v42  ;;  %v3562_v55 = vld [vmem:[#allocation95_spill] sm:$0xff]  ;;  %s1858_s8 = sshll.u32 %s1908_s0, 4  ;;  %s1859_s8 = int_to_ptr.vmem [resolvable:$true] %s1858_s8 }
 0x270   :  { %v539_v5 = vmul.f32 %v1881_v2, %v3561_v45  ;;  %s1882_s9 = scalar_lea.vmem %s1859_s8, 16  ;;  %s1886_s10 = scalar_lea.vmem %s1859_s8, 32 }
 0x271   :  { %v1811_v59 = vadd.f32 %v1810_v51, %v1748_v25  ;;  %v1660_v54 = vpop.permute.xlu0 %1659  ;;  %v1308_v57 = vadd.f32 %v1244_v3, %v919_v18  ;;  %v3563_v51 = vld [vmem:[#allocation58_spill] sm:$0xff]  ;;  %p1883_p0 = scmp.ne.s32.totalorder %s1859_s8, %s1882_s9  ;;  %p1887_p1 = scmp.lt.s32.totalorder %s1859_s8, %s1859_s8 }
 0x272   :  { %v1645_v23 = vpop.permute.xlu1 %1644  ;;  %v1753_v28 = vmul.f32 %v1660_v54, %v3038_v35  ;;  %v921_v35 = vadd.f32 %v3559_v33, %v537_v4  ;;  %v923_v19 = vadd.f32 %v3562_v55, %v539_v5  ;;  %v1248_v46 = vmul.f32 %v1880_v31, %v3563_v51  ;;  %p1888_p2 = scmp.lt.s32.totalorder %s1886_s10, %s1882_s9 }
 0x273   :  { %v1750_v29 = vmul.f32 %v1645_v23, %v1302_v39  ;;  %v1812_v26 = vadd.f32 %v1811_v59, %v1749_v49 }
 0x274   :  { %v1310_v12 = vadd.f32 %v1246_v32, %v921_v35  ;;  %v1312_v54 = vadd.f32 %v1248_v46, %v923_v19  ;;  %p1889_p3 = por %p1888_p2, %p1887_p1 }
 0x275   :  { %v1813_v50 = vadd.f32 %v1812_v26, %v1750_v29  ;;  %v1670_v36 = vpop.permute.xlu0 %1669  ;;  %v1837_v29 = vshrl.u32 %v1836_v14, 7 }
 0x276   :  { %v1655_v27 = vpop.permute.xlu1 %1654  ;;  %v1755_v8 = vmul.f32 %v1670_v36, %v3049_v47  ;;  %p1890_p4 = pnand %p1889_p3, %p1883_p0 }
 0x277   :  { %v1752_v11 = vmul.f32 %v1655_v27, %v1304_v52  ;;  %v1814_v7 = vadd.f32 %v1813_v50, %v1751_v9  ;;  %v1838_v17 = vsub.s32 0, %v1837_v29 }
 0x279   :  { %v1815_v0 = vadd.f32 %v1814_v7, %v1752_v11  ;;  %v1680_v15 = vpop.permute.xlu0 %1679 }
 0x27a   :  { %v1665_v16 = vpop.permute.xlu1 %1664  ;;  %v1757_v58 = vmul.f32 %v1680_v15, %v3057_v63 }
 0x27b   :  { %v1754_v53 = vmul.f32 %v1665_v16, %v1306_v13  ;;  %v1816_v1 = vadd.f32 %v1815_v0, %v1753_v28 }
 0x27d   :  { %v1817_v60 = vadd.f32 %v1816_v1, %v1754_v53  ;;  %v1690_v48 = vpop.permute.xlu0 %1689 }
 0x27e   :  { %v1675_v37 = vpop.permute.xlu1 %1674  ;;  %v1759_v49 = vmul.f32 %v1690_v48, %v3072_v43 }
 0x27f   :  { %v1756_v10 = vmul.f32 %v1675_v37, %v1308_v57  ;;  %v1818_v21 = vadd.f32 %v1817_v60, %v1755_v8 }
 0x281   :  { %v1819_v20 = vadd.f32 %v1818_v21, %v1756_v10  ;;  %v1834_v9 = vpop.permute.xlu0 %1833 }
 0x282   :  { %v1685_v25 = vpop.permute.xlu1 %1684  ;;  %v1839_v52 = vrot.slane %v1834_v9, %v1838_v17 }
 0x283   :  { %v1758_v47 = vmul.f32 %v1685_v25, %v1310_v12  ;;  %v1820_v62 = vadd.f32 %v1819_v20, %v1757_v58 }
 0x285   :  { %v1821_v59 = vadd.f32 %v1820_v62, %v1758_v47 }
 0x286   :  { %v1695_v39 = vpop.permute.xlu1 %1694 }
 0x287   :  { %v1760_v23 = vmul.f32 %v1695_v39, %v1312_v54  ;;  %v1822_v38 = vadd.f32 %v1821_v59, %v1759_v49 }
 0x289   :  { %v1823_v61 = vadd.f32 %v1822_v38, %v1760_v23 }
 0x28b   :  { %v1824_v24 = vrot.slane %v1823_v61, 4 }
 0x28d   :  { %v1825_v63 = vadd.f32 %v1824_v24, %v1823_v61 }
 0x28f   :  { %v1826_v26 = vrot.slane %v1825_v63, 2 }
 0x291   :  { %v1827_v34 = vadd.f32 %v1826_v26, %v1825_v63 }
 0x293   :  { %v1828_v50 = vrot.slane %v1827_v34, 1 }
 0x295   :  { %v1829_v36 = vadd.f32 %v1828_v50, %v1827_v34 }
 0x297   :  { %v1840_v27 = vadd.f32 %v1839_v52, %v1829_v36 }
 0x299   :  { %v1841_v56 = vand.u32 2147483647, %v1840_v27  ;;  %vm1848_vm0 = vcmp.ge.f32.partialorder %v1840_v27, 0.0 }
 0x29b   :  { %v1842_v43 = vsub.f32 0.0, %v1841_v56 }
 0x29d   :  { %v1843_v44 = vmul.f32 1.442695, %v1842_v43 }
 0x29f   :  { %1876 = vpow2.f32 %v1843_v44 }
 0x2a9   :  { %v1877_v22 = vpop.eup %1876 }
 0x2aa   :  { %v1845_v41 = vadd.f32 1.0, %v1877_v22 }
 0x2ac   :  { %1878 = vrcp.f32 %v1845_v41 }
 0x2b6   :  { %v1879_v11 = vpop.eup %1878 }
 0x2b7   :  { %v1849_v7 = vmul.f32 %v1879_v11, %v1877_v22 }
 0x2b9   :  { %v1850_v6 = vsel %vm1848_vm0, %v1879_v11, %v1849_v7 }
 0x2ba   :  { %1851 = vst [vmem:[#allocation3] sm:$0x1] %v1850_v6 }
 0x2bb   :  { %1893 = shalt.err (!%p1890_p4)
}
 0x2bc   :  { %s1894_s13 = scalar_lea.hbm %s3339_s5, 16 }
 0x2bd   :  { %p1895_p5 = scmp.ne.s32.totalorder %s3339_s5, %s1894_s13  ;;  %p1898_p6 = scmp.lt.u32.totalorder %s1894_s13, %s3339_s5 }
 0x2bf   :  { %p1900_p7 = pnand %p1898_p6, %p1895_p5 }
 0x2c1   :  { %1903 = shalt.err (!%p1900_p7)
}
 0x2c2   :  { %1861 = dma.vmem_to_hbm [thread:$0]  %s1859_s8, 16, %s3339_s5, [#allocation4]  }
 0x2c3   :  { %1904 = dma.done.wait [#allocation4], 16  }
 0x2c4   :  { %1905 = vsyncadd [#allocation4], 4294967280 }
 0x2c5   :  { %1865 = vsyncpa [#allocation4], 1 }

</bundles_post_ra>
